<compile_context>
chip_gen: v6e
topology: v6e:2x2x1
jax: 0.10.0
libtpu: 0.0.40
codegen_flags: <defaults>
</compile_context>

<pallas_src>
import math

import jax
import jax.numpy as jnp
from jax import lax
from jax.experimental import pallas as pl
from jax.experimental.pallas import tpu as pltpu  # noqa: F401  (TPU backend)

# ---------------- config (small, consistent with the module) ----------------
VOCAB = 64
VOCAB_PAD = 128          # lane-dense LM-head output (sliced back to VOCAB)
BLOCK_SIZE = 8           # max sequence length
N_EMBD = 32
N_HEAD = 4
N_LAYER = 2
HEAD_DIM = N_EMBD // N_HEAD
LN_EPS = 1e-5


# ------------------------------ fused kernel ---------------------------------
def _layernorm(x, g, b):
    mean = jnp.mean(x, axis=-1, keepdims=True)
    var = jnp.mean((x - mean) ** 2, axis=-1, keepdims=True)
    return (x - mean) * lax.rsqrt(var + LN_EPS) * g + b


def _gpt_kernel(x0_ref, mask_ref,
                ln1_g_ref, ln1_b_ref, wqkv_ref, bqkv_ref, wproj_ref, bproj_ref,
                ln2_g_ref, ln2_b_ref, wfc1_ref, bfc1_ref, wfc2_ref, bfc2_ref,
                lnf_g_ref, lnf_b_ref, headw_ref,
                out_ref):
    """Whole GPT forward: N_LAYER blocks (unrolled) + final LN + LM head."""
    C = N_EMBD
    hd = HEAD_DIM
    scale = 1.0 / math.sqrt(hd)

    x = x0_ref[...]              # [M, C] residual stream (kept in vregs)
    bias = mask_ref[...]         # [M, M] additive causal/block-diag mask

    for l in range(N_LAYER):     # fully unrolled layer loop
        # ---------------- causal self-attention ----------------
        h1 = _layernorm(x, ln1_g_ref[l], ln1_b_ref[l])                    # [M, C]
        qkv = jnp.dot(h1, wqkv_ref[l],
                      preferred_element_type=jnp.float32) + bqkv_ref[l]   # [M, 3C]

        ys = []
        for h in range(N_HEAD):
            q_h = qkv[:, h * hd:(h + 1) * hd]                             # [M, hd]
            k_h = qkv[:, C + h * hd:C + (h + 1) * hd]
            v_h = qkv[:, 2 * C + h * hd:2 * C + (h + 1) * hd]
            s = jnp.einsum('md,nd->mn', q_h, k_h,
                           preferred_element_type=jnp.float32) * scale    # [M, M]
            s = s + bias
            s = s - jnp.max(s, axis=-1, keepdims=True)
            p = jnp.exp(s)
            p = p * pl.reciprocal(jnp.sum(p, axis=-1, keepdims=True),
                                  approx=True)
            ys.append(jnp.dot(p, v_h, preferred_element_type=jnp.float32))
        y = jnp.concatenate(ys, axis=1)                                   # [M, C]

        attn_out = jnp.dot(y, wproj_ref[l],
                           preferred_element_type=jnp.float32) + bproj_ref[l]
        x = x + attn_out                                                  # residual 1

        # ------------------------- MLP --------------------------
        h2 = _layernorm(x, ln2_g_ref[l], ln2_b_ref[l])
        hm = jnp.dot(h2, wfc1_ref[l],
                     preferred_element_type=jnp.float32) + bfc1_ref[l]
        # exact (erf) GELU, matching nn.GELU() default
        hm = 0.5 * hm * (1.0 + lax.erf(hm * (1.0 / math.sqrt(2.0))))
        mlp_out = jnp.dot(hm, wfc2_ref[l],
                          preferred_element_type=jnp.float32) + bfc2_ref[l]
        x = x + mlp_out                                                   # residual 2

    # ------------------- final LN + LM head (128-lane padded) ----------------
    xf = _layernorm(x, lnf_g_ref[...], lnf_b_ref[...])
    out_ref[...] = jnp.dot(xf, headw_ref[...],
                           preferred_element_type=jnp.float32)            # no bias


# ------------------------------ pallas wrapper --------------------------------
_LAYER_KEYS = ("ln1_g", "ln1_b", "w_qkv", "b_qkv", "w_proj", "b_proj",
               "ln2_g", "ln2_b", "w_fc1", "b_fc1", "w_fc2", "b_fc2")


def gpt_forward(params, idx):
    B, T = idx.shape
    assert T <= BLOCK_SIZE, "Cannot forward, model block size is exhausted."
    M = B * T

    # Embedding gather + position add (XLA glue); embd dropout = identity (eval).
    tok = jnp.take(params["tok_emb"], idx, axis=0)            # (B, T, C)
    pos = params["pos_emb"][:, :T, :]                         # (1, T, C)
    x0 = (tok + pos).reshape(M, N_EMBD).astype(jnp.float32)

    # Layer-invariant additive mask over the flattened B*T axis: causal +
    # block-diagonal (tokens never attend across batch elements).
    row = jnp.arange(M, dtype=jnp.int32)[:, None]
    col = jnp.arange(M, dtype=jnp.int32)[None, :]
    allowed = (row // T == col // T) & (col <= row)
    mask_bias = jnp.where(allowed, 0.0, -1e30).astype(jnp.float32)

    layer_args = [params["layers"][k] for k in _LAYER_KEYS]

    # No grid: single kernel invocation, all operands full-array VMEM residents.
    logits_pad = pl.pallas_call(
        _gpt_kernel,
        out_shape=jax.ShapeDtypeStruct((M, VOCAB_PAD), jnp.float32),
    )(x0, mask_bias, *layer_args,
      params["lnf_g"], params["lnf_b"], params["head_w_pad"])

    return logits_pad[:, :VOCAB].reshape(B, T, VOCAB)
    # TODO(synk): cross-entropy loss path (targets is not None) not implemented.


# ------------------------------ params ----------------------------------------
def init_params(key):
    keys = iter(jax.random.split(key, 2 + 4 * N_LAYER))

    def nrm(shape):
        return 0.02 * jax.random.normal(next(keys), shape, jnp.float32)

    C, H, hd = N_EMBD, N_HEAD, HEAD_DIM
    blocks = []
    for _ in range(N_LAYER):
        kqv_w = nrm((C, 3 * C))                       # x @ W layout (in, out)
        kqv_b = jnp.zeros((3 * C,), jnp.float32)
        proj_w = nrm((C, C))
        fc1_w = nrm((C, 4 * C))
        fc2_w = nrm((4 * C, C))

        # minGPT layout: kqv output viewed as [.., H, 3*hd], split into k, q, v
        # (in that order) along the last dim.  Repack columns so the kernel's
        # single fused matmul emits [ q | k | v ], each head-major.
        w4 = kqv_w.reshape(C, H, 3, hd)               # [C, H, {k,q,v}, hd]
        w_qkv = jnp.concatenate(
            [w4[:, :, 1, :].reshape(C, C),            # q (head-major cols)
             w4[:, :, 0, :].reshape(C, C),            # k
             w4[:, :, 2, :].reshape(C, C)], axis=1)   # v    -> [C, 3C]
        b4 = kqv_b.reshape(H, 3, hd)
        b_qkv = jnp.concatenate(
            [b4[:, 1, :].reshape(-1), b4[:, 0, :].reshape(-1),
             b4[:, 2, :].reshape(-1)]).reshape(1, 3 * C)

        blocks.append(dict(
            ln1_g=jnp.ones((1, C), jnp.float32),
            ln1_b=jnp.zeros((1, C), jnp.float32),
            w_qkv=w_qkv, b_qkv=b_qkv,
            w_proj=proj_w, b_proj=jnp.zeros((1, C), jnp.float32),
            ln2_g=jnp.ones((1, C), jnp.float32),
            ln2_b=jnp.zeros((1, C), jnp.float32),
            w_fc1=fc1_w, b_fc1=jnp.zeros((1, 4 * C), jnp.float32),
            w_fc2=fc2_w, b_fc2=jnp.zeros((1, C), jnp.float32),
        ))

    # Stack per-layer weights along a leading layer axis (indexed statically
    # inside the unrolled in-kernel layer loop).
    stacked = {k: jnp.stack([b[k] for b in blocks], axis=0) for k in _LAYER_KEYS}

    head_w = nrm((C, VOCAB))                          # head is bias-free
    head_w_pad = jnp.zeros((C, VOCAB_PAD), jnp.float32).at[:, :VOCAB].set(head_w)

    return {
        "tok_emb": nrm((VOCAB, C)),
        # pos_emb initialized to zeros, exactly as in the PyTorch module
        "pos_emb": jnp.zeros((1, BLOCK_SIZE, C), jnp.float32),
        "lnf_g": jnp.ones((1, C), jnp.float32),
        "lnf_b": jnp.zeros((1, C), jnp.float32),
        "head_w_pad": head_w_pad,
        "layers": stacked,
    }


# ----------------------------------- main --------------------------------------
if __name__ == "__main__":
    key = jax.random.PRNGKey(0)
    pkey, dkey = jax.random.split(key)
    params = init_params(pkey)
    idx = jax.random.randint(dkey, (2, BLOCK_SIZE), 0, VOCAB, dtype=jnp.int32)

    fwd = jax.jit(gpt_forward)
    logits = fwd(params, idx)
    jax.block_until_ready(logits)

    assert logits.shape == (2, BLOCK_SIZE, VOCAB)
    assert bool(jnp.all(jnp.isfinite(logits)))
    print("KERNEL_OK")
</pallas_src>

<mosaic_0001>
module attributes {stable_mosaic.version = 11 : i64} {
  func.func @_gpt_kernel(%arg0: memref<16x32xf32, #tpu.memory_space<vmem>>, %arg1: memref<16x16xf32, #tpu.memory_space<vmem>>, %arg2: memref<2x1x32xf32, #tpu.memory_space<vmem>>, %arg3: memref<2x1x32xf32, #tpu.memory_space<vmem>>, %arg4: memref<2x32x96xf32, #tpu.memory_space<vmem>>, %arg5: memref<2x1x96xf32, #tpu.memory_space<vmem>>, %arg6: memref<2x32x32xf32, #tpu.memory_space<vmem>>, %arg7: memref<2x1x32xf32, #tpu.memory_space<vmem>>, %arg8: memref<2x1x32xf32, #tpu.memory_space<vmem>>, %arg9: memref<2x1x32xf32, #tpu.memory_space<vmem>>, %arg10: memref<2x32x128xf32, #tpu.memory_space<vmem>>, %arg11: memref<2x1x128xf32, #tpu.memory_space<vmem>>, %arg12: memref<2x128x32xf32, #tpu.memory_space<vmem>>, %arg13: memref<2x1x32xf32, #tpu.memory_space<vmem>>, %arg14: memref<1x32xf32, #tpu.memory_space<vmem>>, %arg15: memref<1x32xf32, #tpu.memory_space<vmem>>, %arg16: memref<32x128xf32, #tpu.memory_space<vmem>>, %arg17: memref<16x128xf32, #tpu.memory_space<vmem>>) attributes {dimension_semantics = [], scalar_prefetch = 0 : i64, scratch_operands = 0 : i64, tpu.core_type = #tpu.core_type<tc>} {
    %c0 = arith.constant 0 : index
    %c0_0 = arith.constant 0 : index
    %0 = vector.load %arg0[%c0, %c0_0] : memref<16x32xf32, #tpu.memory_space<vmem>>, vector<16x32xf32>
    %c0_1 = arith.constant 0 : index
    %c0_2 = arith.constant 0 : index
    %1 = vector.load %arg1[%c0_1, %c0_2] : memref<16x16xf32, #tpu.memory_space<vmem>>, vector<16x16xf32>
    %c0_3 = arith.constant 0 : index
    %c0_4 = arith.constant 0 : index
    %c0_5 = arith.constant 0 : index
    %2 = vector.load %arg2[%c0_3, %c0_4, %c0_5] : memref<2x1x32xf32, #tpu.memory_space<vmem>>, vector<1x1x32xf32>
    %3 = vector.shape_cast %2 : vector<1x1x32xf32> to vector<1x32xf32>
    %c0_6 = arith.constant 0 : index
    %c0_7 = arith.constant 0 : index
    %c0_8 = arith.constant 0 : index
    %4 = vector.load %arg3[%c0_6, %c0_7, %c0_8] : memref<2x1x32xf32, #tpu.memory_space<vmem>>, vector<1x1x32xf32>
    %5 = vector.shape_cast %4 : vector<1x1x32xf32> to vector<1x32xf32>
    %cst = arith.constant dense<0.000000e+00> : vector<16xf32>
    %6 = vector.multi_reduction <add>, %0, %cst [1] : vector<16x32xf32> to vector<16xf32>
    %7 = vector.shape_cast %6 : vector<16xf32> to vector<16x1xf32>
    %cst_9 = arith.constant 3.200000e+01 : f32
    %8 = vector.broadcast %cst_9 : f32 to vector<16x1xf32>
    %9 = arith.divf %7, %8 : vector<16x1xf32>
    %10 = vector.broadcast %9 : vector<16x1xf32> to vector<16x32xf32>
    %11 = arith.subf %0, %10 : vector<16x32xf32>
    %12 = arith.mulf %11, %11 : vector<16x32xf32>
    %cst_10 = arith.constant dense<0.000000e+00> : vector<16xf32>
    %13 = vector.multi_reduction <add>, %12, %cst_10 [1] : vector<16x32xf32> to vector<16xf32>
    %14 = vector.shape_cast %13 : vector<16xf32> to vector<16x1xf32>
    %cst_11 = arith.constant 3.200000e+01 : f32
    %15 = vector.broadcast %cst_11 : f32 to vector<16x1xf32>
    %16 = arith.divf %14, %15 : vector<16x1xf32>
    %17 = vector.broadcast %9 : vector<16x1xf32> to vector<16x32xf32>
    %18 = arith.subf %0, %17 : vector<16x32xf32>
    %cst_12 = arith.constant 9.99999974E-6 : f32
    %19 = vector.broadcast %cst_12 : f32 to vector<16x1xf32>
    %20 = arith.addf %16, %19 : vector<16x1xf32>
    %21 = math.rsqrt %20 : vector<16x1xf32>
    %22 = vector.broadcast %21 : vector<16x1xf32> to vector<16x32xf32>
    %23 = arith.mulf %18, %22 : vector<16x32xf32>
    %24 = vector.broadcast %3 : vector<1x32xf32> to vector<16x32xf32>
    %25 = arith.mulf %23, %24 : vector<16x32xf32>
    %26 = vector.broadcast %5 : vector<1x32xf32> to vector<16x32xf32>
    %27 = arith.addf %25, %26 : vector<16x32xf32>
    %c0_13 = arith.constant 0 : index
    %c0_14 = arith.constant 0 : index
    %c0_15 = arith.constant 0 : index
    %28 = vector.load %arg4[%c0_13, %c0_14, %c0_15] : memref<2x32x96xf32, #tpu.memory_space<vmem>>, vector<1x32x96xf32>
    %29 = vector.shape_cast %28 : vector<1x32x96xf32> to vector<32x96xf32>
    %cst_16 = arith.constant dense<0.000000e+00> : vector<16x96xf32>
    %30 = tpu.matmul %27, %29, %cst_16 {dimension_numbers = #tpu.dot_dimension_numbers<[1], [0], [0], [1], [0, 0, 1, 1], [], []>} : vector<16x32xf32>, vector<32x96xf32>, vector<16x96xf32> -> vector<16x96xf32>
    %c0_17 = arith.constant 0 : index
    %c0_18 = arith.constant 0 : index
    %c0_19 = arith.constant 0 : index
    %31 = vector.load %arg5[%c0_17, %c0_18, %c0_19] : memref<2x1x96xf32, #tpu.memory_space<vmem>>, vector<1x1x96xf32>
    %32 = vector.shape_cast %31 : vector<1x1x96xf32> to vector<1x96xf32>
    %33 = vector.broadcast %32 : vector<1x96xf32> to vector<16x96xf32>
    %34 = arith.addf %30, %33 : vector<16x96xf32>
    %35 = vector.extract_strided_slice %34 {offsets = [0, 0], sizes = [16, 8], strides = [1, 1]} : vector<16x96xf32> to vector<16x8xf32>
    %36 = vector.extract_strided_slice %34 {offsets = [0, 32], sizes = [16, 8], strides = [1, 1]} : vector<16x96xf32> to vector<16x8xf32>
    %37 = vector.extract_strided_slice %34 {offsets = [0, 64], sizes = [16, 8], strides = [1, 1]} : vector<16x96xf32> to vector<16x8xf32>
    "tpu.trace_start"() <{level = 10 : i32, message = "md,nd->mn"}> : () -> ()
    %cst_20 = arith.constant dense<0.000000e+00> : vector<16x16xf32>
    %38 = tpu.matmul %35, %36, %cst_20 {dimension_numbers = #tpu.dot_dimension_numbers<[1], [1], [0], [0], [0, 0, 1, 0], [], []>} : vector<16x8xf32>, vector<16x8xf32>, vector<16x16xf32> -> vector<16x16xf32>
    "tpu.trace_stop"() : () -> ()
    %cst_21 = arith.constant 0.353553385 : f32
    %39 = vector.broadcast %cst_21 : f32 to vector<16x16xf32>
    %40 = arith.mulf %38, %39 : vector<16x16xf32>
    %41 = arith.addf %40, %1 : vector<16x16xf32>
    %cst_22 = arith.constant dense<0xFF800000> : vector<16xf32>
    %42 = vector.multi_reduction <maximumf>, %41, %cst_22 [1] : vector<16x16xf32> to vector<16xf32>
    %43 = vector.shape_cast %42 : vector<16xf32> to vector<16x1xf32>
    %44 = vector.broadcast %43 : vector<16x1xf32> to vector<16x16xf32>
    %45 = arith.subf %41, %44 : vector<16x16xf32>
    %46 = math.exp %45 : vector<16x16xf32>
    %cst_23 = arith.constant dense<0.000000e+00> : vector<16xf32>
    %47 = vector.multi_reduction <add>, %46, %cst_23 [1] : vector<16x16xf32> to vector<16xf32>
    %48 = vector.shape_cast %47 : vector<16xf32> to vector<16x1xf32>
    %49 = tpu.reciprocal %48 {approx = true} : vector<16x1xf32> -> vector<16x1xf32>
    %50 = vector.broadcast %49 : vector<16x1xf32> to vector<16x16xf32>
    %51 = arith.mulf %46, %50 : vector<16x16xf32>
    %cst_24 = arith.constant dense<0.000000e+00> : vector<16x8xf32>
    %52 = tpu.matmul %51, %37, %cst_24 {dimension_numbers = #tpu.dot_dimension_numbers<[1], [0], [0], [1], [0, 0, 1, 1], [], []>} : vector<16x16xf32>, vector<16x8xf32>, vector<16x8xf32> -> vector<16x8xf32>
    %53 = vector.extract_strided_slice %34 {offsets = [0, 8], sizes = [16, 8], strides = [1, 1]} : vector<16x96xf32> to vector<16x8xf32>
    %54 = vector.extract_strided_slice %34 {offsets = [0, 40], sizes = [16, 8], strides = [1, 1]} : vector<16x96xf32> to vector<16x8xf32>
    %55 = vector.extract_strided_slice %34 {offsets = [0, 72], sizes = [16, 8], strides = [1, 1]} : vector<16x96xf32> to vector<16x8xf32>
    "tpu.trace_start"() <{level = 10 : i32, message = "md,nd->mn"}> : () -> ()
    %cst_25 = arith.constant dense<0.000000e+00> : vector<16x16xf32>
    %56 = tpu.matmul %53, %54, %cst_25 {dimension_numbers = #tpu.dot_dimension_numbers<[1], [1], [0], [0], [0, 0, 1, 0], [], []>} : vector<16x8xf32>, vector<16x8xf32>, vector<16x16xf32> -> vector<16x16xf32>
    "tpu.trace_stop"() : () -> ()
    %cst_26 = arith.constant 0.353553385 : f32
    %57 = vector.broadcast %cst_26 : f32 to vector<16x16xf32>
    %58 = arith.mulf %56, %57 : vector<16x16xf32>
    %59 = arith.addf %58, %1 : vector<16x16xf32>
    %cst_27 = arith.constant dense<0xFF800000> : vector<16xf32>
    %60 = vector.multi_reduction <maximumf>, %59, %cst_27 [1] : vector<16x16xf32> to vector<16xf32>
    %61 = vector.shape_cast %60 : vector<16xf32> to vector<16x1xf32>
    %62 = vector.broadcast %61 : vector<16x1xf32> to vector<16x16xf32>
    %63 = arith.subf %59, %62 : vector<16x16xf32>
    %64 = math.exp %63 : vector<16x16xf32>
    %cst_28 = arith.constant dense<0.000000e+00> : vector<16xf32>
    %65 = vector.multi_reduction <add>, %64, %cst_28 [1] : vector<16x16xf32> to vector<16xf32>
    %66 = vector.shape_cast %65 : vector<16xf32> to vector<16x1xf32>
    %67 = tpu.reciprocal %66 {approx = true} : vector<16x1xf32> -> vector<16x1xf32>
    %68 = vector.broadcast %67 : vector<16x1xf32> to vector<16x16xf32>
    %69 = arith.mulf %64, %68 : vector<16x16xf32>
    %cst_29 = arith.constant dense<0.000000e+00> : vector<16x8xf32>
    %70 = tpu.matmul %69, %55, %cst_29 {dimension_numbers = #tpu.dot_dimension_numbers<[1], [0], [0], [1], [0, 0, 1, 1], [], []>} : vector<16x16xf32>, vector<16x8xf32>, vector<16x8xf32> -> vector<16x8xf32>
    %71 = vector.extract_strided_slice %34 {offsets = [0, 16], sizes = [16, 8], strides = [1, 1]} : vector<16x96xf32> to vector<16x8xf32>
    %72 = vector.extract_strided_slice %34 {offsets = [0, 48], sizes = [16, 8], strides = [1, 1]} : vector<16x96xf32> to vector<16x8xf32>
    %73 = vector.extract_strided_slice %34 {offsets = [0, 80], sizes = [16, 8], strides = [1, 1]} : vector<16x96xf32> to vector<16x8xf32>
    "tpu.trace_start"() <{level = 10 : i32, message = "md,nd->mn"}> : () -> ()
    %cst_30 = arith.constant dense<0.000000e+00> : vector<16x16xf32>
    %74 = tpu.matmul %71, %72, %cst_30 {dimension_numbers = #tpu.dot_dimension_numbers<[1], [1], [0], [0], [0, 0, 1, 0], [], []>} : vector<16x8xf32>, vector<16x8xf32>, vector<16x16xf32> -> vector<16x16xf32>
    "tpu.trace_stop"() : () -> ()
    %cst_31 = arith.constant 0.353553385 : f32
    %75 = vector.broadcast %cst_31 : f32 to vector<16x16xf32>
    %76 = arith.mulf %74, %75 : vector<16x16xf32>
    %77 = arith.addf %76, %1 : vector<16x16xf32>
    %cst_32 = arith.constant dense<0xFF800000> : vector<16xf32>
    %78 = vector.multi_reduction <maximumf>, %77, %cst_32 [1] : vector<16x16xf32> to vector<16xf32>
    %79 = vector.shape_cast %78 : vector<16xf32> to vector<16x1xf32>
    %80 = vector.broadcast %79 : vector<16x1xf32> to vector<16x16xf32>
    %81 = arith.subf %77, %80 : vector<16x16xf32>
    %82 = math.exp %81 : vector<16x16xf32>
    %cst_33 = arith.constant dense<0.000000e+00> : vector<16xf32>
    %83 = vector.multi_reduction <add>, %82, %cst_33 [1] : vector<16x16xf32> to vector<16xf32>
    %84 = vector.shape_cast %83 : vector<16xf32> to vector<16x1xf32>
    %85 = tpu.reciprocal %84 {approx = true} : vector<16x1xf32> -> vector<16x1xf32>
    %86 = vector.broadcast %85 : vector<16x1xf32> to vector<16x16xf32>
    %87 = arith.mulf %82, %86 : vector<16x16xf32>
    %cst_34 = arith.constant dense<0.000000e+00> : vector<16x8xf32>
    %88 = tpu.matmul %87, %73, %cst_34 {dimension_numbers = #tpu.dot_dimension_numbers<[1], [0], [0], [1], [0, 0, 1, 1], [], []>} : vector<16x16xf32>, vector<16x8xf32>, vector<16x8xf32> -> vector<16x8xf32>
    %89 = vector.extract_strided_slice %34 {offsets = [0, 24], sizes = [16, 8], strides = [1, 1]} : vector<16x96xf32> to vector<16x8xf32>
    %90 = vector.extract_strided_slice %34 {offsets = [0, 56], sizes = [16, 8], strides = [1, 1]} : vector<16x96xf32> to vector<16x8xf32>
    %91 = vector.extract_strided_slice %34 {offsets = [0, 88], sizes = [16, 8], strides = [1, 1]} : vector<16x96xf32> to vector<16x8xf32>
    "tpu.trace_start"() <{level = 10 : i32, message = "md,nd->mn"}> : () -> ()
    %cst_35 = arith.constant dense<0.000000e+00> : vector<16x16xf32>
    %92 = tpu.matmul %89, %90, %cst_35 {dimension_numbers = #tpu.dot_dimension_numbers<[1], [1], [0], [0], [0, 0, 1, 0], [], []>} : vector<16x8xf32>, vector<16x8xf32>, vector<16x16xf32> -> vector<16x16xf32>
    "tpu.trace_stop"() : () -> ()
    %cst_36 = arith.constant 0.353553385 : f32
    %93 = vector.broadcast %cst_36 : f32 to vector<16x16xf32>
    %94 = arith.mulf %92, %93 : vector<16x16xf32>
    %95 = arith.addf %94, %1 : vector<16x16xf32>
    %cst_37 = arith.constant dense<0xFF800000> : vector<16xf32>
    %96 = vector.multi_reduction <maximumf>, %95, %cst_37 [1] : vector<16x16xf32> to vector<16xf32>
    %97 = vector.shape_cast %96 : vector<16xf32> to vector<16x1xf32>
    %98 = vector.broadcast %97 : vector<16x1xf32> to vector<16x16xf32>
    %99 = arith.subf %95, %98 : vector<16x16xf32>
    %100 = math.exp %99 : vector<16x16xf32>
    %cst_38 = arith.constant dense<0.000000e+00> : vector<16xf32>
    %101 = vector.multi_reduction <add>, %100, %cst_38 [1] : vector<16x16xf32> to vector<16xf32>
    %102 = vector.shape_cast %101 : vector<16xf32> to vector<16x1xf32>
    %103 = tpu.reciprocal %102 {approx = true} : vector<16x1xf32> -> vector<16x1xf32>
    %104 = vector.broadcast %103 : vector<16x1xf32> to vector<16x16xf32>
    %105 = arith.mulf %100, %104 : vector<16x16xf32>
    %cst_39 = arith.constant dense<0.000000e+00> : vector<16x8xf32>
    %106 = tpu.matmul %105, %91, %cst_39 {dimension_numbers = #tpu.dot_dimension_numbers<[1], [0], [0], [1], [0, 0, 1, 1], [], []>} : vector<16x16xf32>, vector<16x8xf32>, vector<16x8xf32> -> vector<16x8xf32>
    %107 = tpu.concatenate %52, %70, %88, %106 in 1 : vector<16x8xf32>, vector<16x8xf32>, vector<16x8xf32>, vector<16x8xf32> -> vector<16x32xf32>
    %c0_40 = arith.constant 0 : index
    %c0_41 = arith.constant 0 : index
    %c0_42 = arith.constant 0 : index
    %108 = vector.load %arg6[%c0_40, %c0_41, %c0_42] : memref<2x32x32xf32, #tpu.memory_space<vmem>>, vector<1x32x32xf32>
    %109 = vector.shape_cast %108 : vector<1x32x32xf32> to vector<32x32xf32>
    %cst_43 = arith.constant dense<0.000000e+00> : vector<16x32xf32>
    %110 = tpu.matmul %107, %109, %cst_43 {dimension_numbers = #tpu.dot_dimension_numbers<[1], [0], [0], [1], [0, 0, 1, 1], [], []>} : vector<16x32xf32>, vector<32x32xf32>, vector<16x32xf32> -> vector<16x32xf32>
    %c0_44 = arith.constant 0 : index
    %c0_45 = arith.constant 0 : index
    %c0_46 = arith.constant 0 : index
    %111 = vector.load %arg7[%c0_44, %c0_45, %c0_46] : memref<2x1x32xf32, #tpu.memory_space<vmem>>, vector<1x1x32xf32>
    %112 = vector.shape_cast %111 : vector<1x1x32xf32> to vector<1x32xf32>
    %113 = vector.broadcast %112 : vector<1x32xf32> to vector<16x32xf32>
    %114 = arith.addf %110, %113 : vector<16x32xf32>
    %115 = arith.addf %0, %114 : vector<16x32xf32>
    %c0_47 = arith.constant 0 : index
    %c0_48 = arith.constant 0 : index
    %c0_49 = arith.constant 0 : index
    %116 = vector.load %arg8[%c0_47, %c0_48, %c0_49] : memref<2x1x32xf32, #tpu.memory_space<vmem>>, vector<1x1x32xf32>
    %117 = vector.shape_cast %116 : vector<1x1x32xf32> to vector<1x32xf32>
    %c0_50 = arith.constant 0 : index
    %c0_51 = arith.constant 0 : index
    %c0_52 = arith.constant 0 : index
    %118 = vector.load %arg9[%c0_50, %c0_51, %c0_52] : memref<2x1x32xf32, #tpu.memory_space<vmem>>, vector<1x1x32xf32>
    %119 = vector.shape_cast %118 : vector<1x1x32xf32> to vector<1x32xf32>
    %cst_53 = arith.constant dense<0.000000e+00> : vector<16xf32>
    %120 = vector.multi_reduction <add>, %115, %cst_53 [1] : vector<16x32xf32> to vector<16xf32>
    %121 = vector.shape_cast %120 : vector<16xf32> to vector<16x1xf32>
    %cst_54 = arith.constant 3.200000e+01 : f32
    %122 = vector.broadcast %cst_54 : f32 to vector<16x1xf32>
    %123 = arith.divf %121, %122 : vector<16x1xf32>
    %124 = vector.broadcast %123 : vector<16x1xf32> to vector<16x32xf32>
    %125 = arith.subf %115, %124 : vector<16x32xf32>
    %126 = arith.mulf %125, %125 : vector<16x32xf32>
    %cst_55 = arith.constant dense<0.000000e+00> : vector<16xf32>
    %127 = vector.multi_reduction <add>, %126, %cst_55 [1] : vector<16x32xf32> to vector<16xf32>
    %128 = vector.shape_cast %127 : vector<16xf32> to vector<16x1xf32>
    %cst_56 = arith.constant 3.200000e+01 : f32
    %129 = vector.broadcast %cst_56 : f32 to vector<16x1xf32>
    %130 = arith.divf %128, %129 : vector<16x1xf32>
    %131 = vector.broadcast %123 : vector<16x1xf32> to vector<16x32xf32>
    %132 = arith.subf %115, %131 : vector<16x32xf32>
    %cst_57 = arith.constant 9.99999974E-6 : f32
    %133 = vector.broadcast %cst_57 : f32 to vector<16x1xf32>
    %134 = arith.addf %130, %133 : vector<16x1xf32>
    %135 = math.rsqrt %134 : vector<16x1xf32>
    %136 = vector.broadcast %135 : vector<16x1xf32> to vector<16x32xf32>
    %137 = arith.mulf %132, %136 : vector<16x32xf32>
    %138 = vector.broadcast %117 : vector<1x32xf32> to vector<16x32xf32>
    %139 = arith.mulf %137, %138 : vector<16x32xf32>
    %140 = vector.broadcast %119 : vector<1x32xf32> to vector<16x32xf32>
    %141 = arith.addf %139, %140 : vector<16x32xf32>
    %c0_58 = arith.constant 0 : index
    %c0_59 = arith.constant 0 : index
    %c0_60 = arith.constant 0 : index
    %142 = vector.load %arg10[%c0_58, %c0_59, %c0_60] : memref<2x32x128xf32, #tpu.memory_space<vmem>>, vector<1x32x128xf32>
    %143 = vector.shape_cast %142 : vector<1x32x128xf32> to vector<32x128xf32>
    %cst_61 = arith.constant dense<0.000000e+00> : vector<16x128xf32>
    %144 = tpu.matmul %141, %143, %cst_61 {dimension_numbers = #tpu.dot_dimension_numbers<[1], [0], [0], [1], [0, 0, 1, 1], [], []>} : vector<16x32xf32>, vector<32x128xf32>, vector<16x128xf32> -> vector<16x128xf32>
    %c0_62 = arith.constant 0 : index
    %c0_63 = arith.constant 0 : index
    %c0_64 = arith.constant 0 : index
    %145 = vector.load %arg11[%c0_62, %c0_63, %c0_64] : memref<2x1x128xf32, #tpu.memory_space<vmem>>, vector<1x1x128xf32>
    %146 = vector.shape_cast %145 : vector<1x1x128xf32> to vector<1x128xf32>
    %147 = vector.broadcast %146 : vector<1x128xf32> to vector<16x128xf32>
    %148 = arith.addf %144, %147 : vector<16x128xf32>
    %cst_65 = arith.constant 5.000000e-01 : f32
    %149 = vector.broadcast %cst_65 : f32 to vector<16x128xf32>
    %150 = arith.mulf %149, %148 : vector<16x128xf32>
    %cst_66 = arith.constant 0.707106769 : f32
    %151 = vector.broadcast %cst_66 : f32 to vector<16x128xf32>
    %152 = arith.mulf %148, %151 : vector<16x128xf32>
    %153 = math.erf %152 : vector<16x128xf32>
    %cst_67 = arith.constant 1.000000e+00 : f32
    %154 = vector.broadcast %cst_67 : f32 to vector<16x128xf32>
    %155 = arith.addf %154, %153 : vector<16x128xf32>
    %156 = arith.mulf %150, %155 : vector<16x128xf32>
    %c0_68 = arith.constant 0 : index
    %c0_69 = arith.constant 0 : index
    %c0_70 = arith.constant 0 : index
    %157 = vector.load %arg12[%c0_68, %c0_69, %c0_70] : memref<2x128x32xf32, #tpu.memory_space<vmem>>, vector<1x128x32xf32>
    %158 = vector.shape_cast %157 : vector<1x128x32xf32> to vector<128x32xf32>
    %cst_71 = arith.constant dense<0.000000e+00> : vector<16x32xf32>
    %159 = tpu.matmul %156, %158, %cst_71 {dimension_numbers = #tpu.dot_dimension_numbers<[1], [0], [0], [1], [0, 0, 1, 1], [], []>} : vector<16x128xf32>, vector<128x32xf32>, vector<16x32xf32> -> vector<16x32xf32>
    %c0_72 = arith.constant 0 : index
    %c0_73 = arith.constant 0 : index
    %c0_74 = arith.constant 0 : index
    %160 = vector.load %arg13[%c0_72, %c0_73, %c0_74] : memref<2x1x32xf32, #tpu.memory_space<vmem>>, vector<1x1x32xf32>
    %161 = vector.shape_cast %160 : vector<1x1x32xf32> to vector<1x32xf32>
    %162 = vector.broadcast %161 : vector<1x32xf32> to vector<16x32xf32>
    %163 = arith.addf %159, %162 : vector<16x32xf32>
    %164 = arith.addf %115, %163 : vector<16x32xf32>
    %c1 = arith.constant 1 : index
    %c0_75 = arith.constant 0 : index
    %c0_76 = arith.constant 0 : index
    %165 = vector.load %arg2[%c1, %c0_75, %c0_76] : memref<2x1x32xf32, #tpu.memory_space<vmem>>, vector<1x1x32xf32>
    %166 = vector.shape_cast %165 : vector<1x1x32xf32> to vector<1x32xf32>
    %c1_77 = arith.constant 1 : index
    %c0_78 = arith.constant 0 : index
    %c0_79 = arith.constant 0 : index
    %167 = vector.load %arg3[%c1_77, %c0_78, %c0_79] : memref<2x1x32xf32, #tpu.memory_space<vmem>>, vector<1x1x32xf32>
    %168 = vector.shape_cast %167 : vector<1x1x32xf32> to vector<1x32xf32>
    %cst_80 = arith.constant dense<0.000000e+00> : vector<16xf32>
    %169 = vector.multi_reduction <add>, %164, %cst_80 [1] : vector<16x32xf32> to vector<16xf32>
    %170 = vector.shape_cast %169 : vector<16xf32> to vector<16x1xf32>
    %cst_81 = arith.constant 3.200000e+01 : f32
    %171 = vector.broadcast %cst_81 : f32 to vector<16x1xf32>
    %172 = arith.divf %170, %171 : vector<16x1xf32>
    %173 = vector.broadcast %172 : vector<16x1xf32> to vector<16x32xf32>
    %174 = arith.subf %164, %173 : vector<16x32xf32>
    %175 = arith.mulf %174, %174 : vector<16x32xf32>
    %cst_82 = arith.constant dense<0.000000e+00> : vector<16xf32>
    %176 = vector.multi_reduction <add>, %175, %cst_82 [1] : vector<16x32xf32> to vector<16xf32>
    %177 = vector.shape_cast %176 : vector<16xf32> to vector<16x1xf32>
    %cst_83 = arith.constant 3.200000e+01 : f32
    %178 = vector.broadcast %cst_83 : f32 to vector<16x1xf32>
    %179 = arith.divf %177, %178 : vector<16x1xf32>
    %180 = vector.broadcast %172 : vector<16x1xf32> to vector<16x32xf32>
    %181 = arith.subf %164, %180 : vector<16x32xf32>
    %cst_84 = arith.constant 9.99999974E-6 : f32
    %182 = vector.broadcast %cst_84 : f32 to vector<16x1xf32>
    %183 = arith.addf %179, %182 : vector<16x1xf32>
    %184 = math.rsqrt %183 : vector<16x1xf32>
    %185 = vector.broadcast %184 : vector<16x1xf32> to vector<16x32xf32>
    %186 = arith.mulf %181, %185 : vector<16x32xf32>
    %187 = vector.broadcast %166 : vector<1x32xf32> to vector<16x32xf32>
    %188 = arith.mulf %186, %187 : vector<16x32xf32>
    %189 = vector.broadcast %168 : vector<1x32xf32> to vector<16x32xf32>
    %190 = arith.addf %188, %189 : vector<16x32xf32>
    %c1_85 = arith.constant 1 : index
    %c0_86 = arith.constant 0 : index
    %c0_87 = arith.constant 0 : index
    %191 = vector.load %arg4[%c1_85, %c0_86, %c0_87] : memref<2x32x96xf32, #tpu.memory_space<vmem>>, vector<1x32x96xf32>
    %192 = vector.shape_cast %191 : vector<1x32x96xf32> to vector<32x96xf32>
    %cst_88 = arith.constant dense<0.000000e+00> : vector<16x96xf32>
    %193 = tpu.matmul %190, %192, %cst_88 {dimension_numbers = #tpu.dot_dimension_numbers<[1], [0], [0], [1], [0, 0, 1, 1], [], []>} : vector<16x32xf32>, vector<32x96xf32>, vector<16x96xf32> -> vector<16x96xf32>
    %c1_89 = arith.constant 1 : index
    %c0_90 = arith.constant 0 : index
    %c0_91 = arith.constant 0 : index
    %194 = vector.load %arg5[%c1_89, %c0_90, %c0_91] : memref<2x1x96xf32, #tpu.memory_space<vmem>>, vector<1x1x96xf32>
    %195 = vector.shape_cast %194 : vector<1x1x96xf32> to vector<1x96xf32>
    %196 = vector.broadcast %195 : vector<1x96xf32> to vector<16x96xf32>
    %197 = arith.addf %193, %196 : vector<16x96xf32>
    %198 = vector.extract_strided_slice %197 {offsets = [0, 0], sizes = [16, 8], strides = [1, 1]} : vector<16x96xf32> to vector<16x8xf32>
    %199 = vector.extract_strided_slice %197 {offsets = [0, 32], sizes = [16, 8], strides = [1, 1]} : vector<16x96xf32> to vector<16x8xf32>
    %200 = vector.extract_strided_slice %197 {offsets = [0, 64], sizes = [16, 8], strides = [1, 1]} : vector<16x96xf32> to vector<16x8xf32>
    "tpu.trace_start"() <{level = 10 : i32, message = "md,nd->mn"}> : () -> ()
    %cst_92 = arith.constant dense<0.000000e+00> : vector<16x16xf32>
    %201 = tpu.matmul %198, %199, %cst_92 {dimension_numbers = #tpu.dot_dimension_numbers<[1], [1], [0], [0], [0, 0, 1, 0], [], []>} : vector<16x8xf32>, vector<16x8xf32>, vector<16x16xf32> -> vector<16x16xf32>
    "tpu.trace_stop"() : () -> ()
    %cst_93 = arith.constant 0.353553385 : f32
    %202 = vector.broadcast %cst_93 : f32 to vector<16x16xf32>
    %203 = arith.mulf %201, %202 : vector<16x16xf32>
    %204 = arith.addf %203, %1 : vector<16x16xf32>
    %cst_94 = arith.constant dense<0xFF800000> : vector<16xf32>
    %205 = vector.multi_reduction <maximumf>, %204, %cst_94 [1] : vector<16x16xf32> to vector<16xf32>
    %206 = vector.shape_cast %205 : vector<16xf32> to vector<16x1xf32>
    %207 = vector.broadcast %206 : vector<16x1xf32> to vector<16x16xf32>
    %208 = arith.subf %204, %207 : vector<16x16xf32>
    %209 = math.exp %208 : vector<16x16xf32>
    %cst_95 = arith.constant dense<0.000000e+00> : vector<16xf32>
    %210 = vector.multi_reduction <add>, %209, %cst_95 [1] : vector<16x16xf32> to vector<16xf32>
    %211 = vector.shape_cast %210 : vector<16xf32> to vector<16x1xf32>
    %212 = tpu.reciprocal %211 {approx = true} : vector<16x1xf32> -> vector<16x1xf32>
    %213 = vector.broadcast %212 : vector<16x1xf32> to vector<16x16xf32>
    %214 = arith.mulf %209, %213 : vector<16x16xf32>
    %cst_96 = arith.constant dense<0.000000e+00> : vector<16x8xf32>
    %215 = tpu.matmul %214, %200, %cst_96 {dimension_numbers = #tpu.dot_dimension_numbers<[1], [0], [0], [1], [0, 0, 1, 1], [], []>} : vector<16x16xf32>, vector<16x8xf32>, vector<16x8xf32> -> vector<16x8xf32>
    %216 = vector.extract_strided_slice %197 {offsets = [0, 8], sizes = [16, 8], strides = [1, 1]} : vector<16x96xf32> to vector<16x8xf32>
    %217 = vector.extract_strided_slice %197 {offsets = [0, 40], sizes = [16, 8], strides = [1, 1]} : vector<16x96xf32> to vector<16x8xf32>
    %218 = vector.extract_strided_slice %197 {offsets = [0, 72], sizes = [16, 8], strides = [1, 1]} : vector<16x96xf32> to vector<16x8xf32>
    "tpu.trace_start"() <{level = 10 : i32, message = "md,nd->mn"}> : () -> ()
    %cst_97 = arith.constant dense<0.000000e+00> : vector<16x16xf32>
    %219 = tpu.matmul %216, %217, %cst_97 {dimension_numbers = #tpu.dot_dimension_numbers<[1], [1], [0], [0], [0, 0, 1, 0], [], []>} : vector<16x8xf32>, vector<16x8xf32>, vector<16x16xf32> -> vector<16x16xf32>
    "tpu.trace_stop"() : () -> ()
    %cst_98 = arith.constant 0.353553385 : f32
    %220 = vector.broadcast %cst_98 : f32 to vector<16x16xf32>
    %221 = arith.mulf %219, %220 : vector<16x16xf32>
    %222 = arith.addf %221, %1 : vector<16x16xf32>
    %cst_99 = arith.constant dense<0xFF800000> : vector<16xf32>
    %223 = vector.multi_reduction <maximumf>, %222, %cst_99 [1] : vector<16x16xf32> to vector<16xf32>
    %224 = vector.shape_cast %223 : vector<16xf32> to vector<16x1xf32>
    %225 = vector.broadcast %224 : vector<16x1xf32> to vector<16x16xf32>
    %226 = arith.subf %222, %225 : vector<16x16xf32>
    %227 = math.exp %226 : vector<16x16xf32>
    %cst_100 = arith.constant dense<0.000000e+00> : vector<16xf32>
    %228 = vector.multi_reduction <add>, %227, %cst_100 [1] : vector<16x16xf32> to vector<16xf32>
    %229 = vector.shape_cast %228 : vector<16xf32> to vector<16x1xf32>
    %230 = tpu.reciprocal %229 {approx = true} : vector<16x1xf32> -> vector<16x1xf32>
    %231 = vector.broadcast %230 : vector<16x1xf32> to vector<16x16xf32>
    %232 = arith.mulf %227, %231 : vector<16x16xf32>
    %cst_101 = arith.constant dense<0.000000e+00> : vector<16x8xf32>
    %233 = tpu.matmul %232, %218, %cst_101 {dimension_numbers = #tpu.dot_dimension_numbers<[1], [0], [0], [1], [0, 0, 1, 1], [], []>} : vector<16x16xf32>, vector<16x8xf32>, vector<16x8xf32> -> vector<16x8xf32>
    %234 = vector.extract_strided_slice %197 {offsets = [0, 16], sizes = [16, 8], strides = [1, 1]} : vector<16x96xf32> to vector<16x8xf32>
    %235 = vector.extract_strided_slice %197 {offsets = [0, 48], sizes = [16, 8], strides = [1, 1]} : vector<16x96xf32> to vector<16x8xf32>
    %236 = vector.extract_strided_slice %197 {offsets = [0, 80], sizes = [16, 8], strides = [1, 1]} : vector<16x96xf32> to vector<16x8xf32>
    "tpu.trace_start"() <{level = 10 : i32, message = "md,nd->mn"}> : () -> ()
    %cst_102 = arith.constant dense<0.000000e+00> : vector<16x16xf32>
    %237 = tpu.matmul %234, %235, %cst_102 {dimension_numbers = #tpu.dot_dimension_numbers<[1], [1], [0], [0], [0, 0, 1, 0], [], []>} : vector<16x8xf32>, vector<16x8xf32>, vector<16x16xf32> -> vector<16x16xf32>
    "tpu.trace_stop"() : () -> ()
    %cst_103 = arith.constant 0.353553385 : f32
    %238 = vector.broadcast %cst_103 : f32 to vector<16x16xf32>
    %239 = arith.mulf %237, %238 : vector<16x16xf32>
    %240 = arith.addf %239, %1 : vector<16x16xf32>
    %cst_104 = arith.constant dense<0xFF800000> : vector<16xf32>
    %241 = vector.multi_reduction <maximumf>, %240, %cst_104 [1] : vector<16x16xf32> to vector<16xf32>
    %242 = vector.shape_cast %241 : vector<16xf32> to vector<16x1xf32>
    %243 = vector.broadcast %242 : vector<16x1xf32> to vector<16x16xf32>
    %244 = arith.subf %240, %243 : vector<16x16xf32>
    %245 = math.exp %244 : vector<16x16xf32>
    %cst_105 = arith.constant dense<0.000000e+00> : vector<16xf32>
    %246 = vector.multi_reduction <add>, %245, %cst_105 [1] : vector<16x16xf32> to vector<16xf32>
    %247 = vector.shape_cast %246 : vector<16xf32> to vector<16x1xf32>
    %248 = tpu.reciprocal %247 {approx = true} : vector<16x1xf32> -> vector<16x1xf32>
    %249 = vector.broadcast %248 : vector<16x1xf32> to vector<16x16xf32>
    %250 = arith.mulf %245, %249 : vector<16x16xf32>
    %cst_106 = arith.constant dense<0.000000e+00> : vector<16x8xf32>
    %251 = tpu.matmul %250, %236, %cst_106 {dimension_numbers = #tpu.dot_dimension_numbers<[1], [0], [0], [1], [0, 0, 1, 1], [], []>} : vector<16x16xf32>, vector<16x8xf32>, vector<16x8xf32> -> vector<16x8xf32>
    %252 = vector.extract_strided_slice %197 {offsets = [0, 24], sizes = [16, 8], strides = [1, 1]} : vector<16x96xf32> to vector<16x8xf32>
    %253 = vector.extract_strided_slice %197 {offsets = [0, 56], sizes = [16, 8], strides = [1, 1]} : vector<16x96xf32> to vector<16x8xf32>
    %254 = vector.extract_strided_slice %197 {offsets = [0, 88], sizes = [16, 8], strides = [1, 1]} : vector<16x96xf32> to vector<16x8xf32>
    "tpu.trace_start"() <{level = 10 : i32, message = "md,nd->mn"}> : () -> ()
    %cst_107 = arith.constant dense<0.000000e+00> : vector<16x16xf32>
    %255 = tpu.matmul %252, %253, %cst_107 {dimension_numbers = #tpu.dot_dimension_numbers<[1], [1], [0], [0], [0, 0, 1, 0], [], []>} : vector<16x8xf32>, vector<16x8xf32>, vector<16x16xf32> -> vector<16x16xf32>
    "tpu.trace_stop"() : () -> ()
    %cst_108 = arith.constant 0.353553385 : f32
    %256 = vector.broadcast %cst_108 : f32 to vector<16x16xf32>
    %257 = arith.mulf %255, %256 : vector<16x16xf32>
    %258 = arith.addf %257, %1 : vector<16x16xf32>
    %cst_109 = arith.constant dense<0xFF800000> : vector<16xf32>
    %259 = vector.multi_reduction <maximumf>, %258, %cst_109 [1] : vector<16x16xf32> to vector<16xf32>
    %260 = vector.shape_cast %259 : vector<16xf32> to vector<16x1xf32>
    %261 = vector.broadcast %260 : vector<16x1xf32> to vector<16x16xf32>
    %262 = arith.subf %258, %261 : vector<16x16xf32>
    %263 = math.exp %262 : vector<16x16xf32>
    %cst_110 = arith.constant dense<0.000000e+00> : vector<16xf32>
    %264 = vector.multi_reduction <add>, %263, %cst_110 [1] : vector<16x16xf32> to vector<16xf32>
    %265 = vector.shape_cast %264 : vector<16xf32> to vector<16x1xf32>
    %266 = tpu.reciprocal %265 {approx = true} : vector<16x1xf32> -> vector<16x1xf32>
    %267 = vector.broadcast %266 : vector<16x1xf32> to vector<16x16xf32>
    %268 = arith.mulf %263, %267 : vector<16x16xf32>
    %cst_111 = arith.constant dense<0.000000e+00> : vector<16x8xf32>
    %269 = tpu.matmul %268, %254, %cst_111 {dimension_numbers = #tpu.dot_dimension_numbers<[1], [0], [0], [1], [0, 0, 1, 1], [], []>} : vector<16x16xf32>, vector<16x8xf32>, vector<16x8xf32> -> vector<16x8xf32>
    %270 = tpu.concatenate %215, %233, %251, %269 in 1 : vector<16x8xf32>, vector<16x8xf32>, vector<16x8xf32>, vector<16x8xf32> -> vector<16x32xf32>
    %c1_112 = arith.constant 1 : index
    %c0_113 = arith.constant 0 : index
    %c0_114 = arith.constant 0 : index
    %271 = vector.load %arg6[%c1_112, %c0_113, %c0_114] : memref<2x32x32xf32, #tpu.memory_space<vmem>>, vector<1x32x32xf32>
    %272 = vector.shape_cast %271 : vector<1x32x32xf32> to vector<32x32xf32>
    %cst_115 = arith.constant dense<0.000000e+00> : vector<16x32xf32>
    %273 = tpu.matmul %270, %272, %cst_115 {dimension_numbers = #tpu.dot_dimension_numbers<[1], [0], [0], [1], [0, 0, 1, 1], [], []>} : vector<16x32xf32>, vector<32x32xf32>, vector<16x32xf32> -> vector<16x32xf32>
    %c1_116 = arith.constant 1 : index
    %c0_117 = arith.constant 0 : index
    %c0_118 = arith.constant 0 : index
    %274 = vector.load %arg7[%c1_116, %c0_117, %c0_118] : memref<2x1x32xf32, #tpu.memory_space<vmem>>, vector<1x1x32xf32>
    %275 = vector.shape_cast %274 : vector<1x1x32xf32> to vector<1x32xf32>
    %276 = vector.broadcast %275 : vector<1x32xf32> to vector<16x32xf32>
    %277 = arith.addf %273, %276 : vector<16x32xf32>
    %278 = arith.addf %164, %277 : vector<16x32xf32>
    %c1_119 = arith.constant 1 : index
    %c0_120 = arith.constant 0 : index
    %c0_121 = arith.constant 0 : index
    %279 = vector.load %arg8[%c1_119, %c0_120, %c0_121] : memref<2x1x32xf32, #tpu.memory_space<vmem>>, vector<1x1x32xf32>
    %280 = vector.shape_cast %279 : vector<1x1x32xf32> to vector<1x32xf32>
    %c1_122 = arith.constant 1 : index
    %c0_123 = arith.constant 0 : index
    %c0_124 = arith.constant 0 : index
    %281 = vector.load %arg9[%c1_122, %c0_123, %c0_124] : memref<2x1x32xf32, #tpu.memory_space<vmem>>, vector<1x1x32xf32>
    %282 = vector.shape_cast %281 : vector<1x1x32xf32> to vector<1x32xf32>
    %cst_125 = arith.constant dense<0.000000e+00> : vector<16xf32>
    %283 = vector.multi_reduction <add>, %278, %cst_125 [1] : vector<16x32xf32> to vector<16xf32>
    %284 = vector.shape_cast %283 : vector<16xf32> to vector<16x1xf32>
    %cst_126 = arith.constant 3.200000e+01 : f32
    %285 = vector.broadcast %cst_126 : f32 to vector<16x1xf32>
    %286 = arith.divf %284, %285 : vector<16x1xf32>
    %287 = vector.broadcast %286 : vector<16x1xf32> to vector<16x32xf32>
    %288 = arith.subf %278, %287 : vector<16x32xf32>
    %289 = arith.mulf %288, %288 : vector<16x32xf32>
    %cst_127 = arith.constant dense<0.000000e+00> : vector<16xf32>
    %290 = vector.multi_reduction <add>, %289, %cst_127 [1] : vector<16x32xf32> to vector<16xf32>
    %291 = vector.shape_cast %290 : vector<16xf32> to vector<16x1xf32>
    %cst_128 = arith.constant 3.200000e+01 : f32
    %292 = vector.broadcast %cst_128 : f32 to vector<16x1xf32>
    %293 = arith.divf %291, %292 : vector<16x1xf32>
    %294 = vector.broadcast %286 : vector<16x1xf32> to vector<16x32xf32>
    %295 = arith.subf %278, %294 : vector<16x32xf32>
    %cst_129 = arith.constant 9.99999974E-6 : f32
    %296 = vector.broadcast %cst_129 : f32 to vector<16x1xf32>
    %297 = arith.addf %293, %296 : vector<16x1xf32>
    %298 = math.rsqrt %297 : vector<16x1xf32>
    %299 = vector.broadcast %298 : vector<16x1xf32> to vector<16x32xf32>
    %300 = arith.mulf %295, %299 : vector<16x32xf32>
    %301 = vector.broadcast %280 : vector<1x32xf32> to vector<16x32xf32>
    %302 = arith.mulf %300, %301 : vector<16x32xf32>
    %303 = vector.broadcast %282 : vector<1x32xf32> to vector<16x32xf32>
    %304 = arith.addf %302, %303 : vector<16x32xf32>
    %c1_130 = arith.constant 1 : index
    %c0_131 = arith.constant 0 : index
    %c0_132 = arith.constant 0 : index
    %305 = vector.load %arg10[%c1_130, %c0_131, %c0_132] : memref<2x32x128xf32, #tpu.memory_space<vmem>>, vector<1x32x128xf32>
    %306 = vector.shape_cast %305 : vector<1x32x128xf32> to vector<32x128xf32>
    %cst_133 = arith.constant dense<0.000000e+00> : vector<16x128xf32>
    %307 = tpu.matmul %304, %306, %cst_133 {dimension_numbers = #tpu.dot_dimension_numbers<[1], [0], [0], [1], [0, 0, 1, 1], [], []>} : vector<16x32xf32>, vector<32x128xf32>, vector<16x128xf32> -> vector<16x128xf32>
    %c1_134 = arith.constant 1 : index
    %c0_135 = arith.constant 0 : index
    %c0_136 = arith.constant 0 : index
    %308 = vector.load %arg11[%c1_134, %c0_135, %c0_136] : memref<2x1x128xf32, #tpu.memory_space<vmem>>, vector<1x1x128xf32>
    %309 = vector.shape_cast %308 : vector<1x1x128xf32> to vector<1x128xf32>
    %310 = vector.broadcast %309 : vector<1x128xf32> to vector<16x128xf32>
    %311 = arith.addf %307, %310 : vector<16x128xf32>
    %cst_137 = arith.constant 5.000000e-01 : f32
    %312 = vector.broadcast %cst_137 : f32 to vector<16x128xf32>
    %313 = arith.mulf %312, %311 : vector<16x128xf32>
    %cst_138 = arith.constant 0.707106769 : f32
    %314 = vector.broadcast %cst_138 : f32 to vector<16x128xf32>
    %315 = arith.mulf %311, %314 : vector<16x128xf32>
    %316 = math.erf %315 : vector<16x128xf32>
    %cst_139 = arith.constant 1.000000e+00 : f32
    %317 = vector.broadcast %cst_139 : f32 to vector<16x128xf32>
    %318 = arith.addf %317, %316 : vector<16x128xf32>
    %319 = arith.mulf %313, %318 : vector<16x128xf32>
    %c1_140 = arith.constant 1 : index
    %c0_141 = arith.constant 0 : index
    %c0_142 = arith.constant 0 : index
    %320 = vector.load %arg12[%c1_140, %c0_141, %c0_142] : memref<2x128x32xf32, #tpu.memory_space<vmem>>, vector<1x128x32xf32>
    %321 = vector.shape_cast %320 : vector<1x128x32xf32> to vector<128x32xf32>
    %cst_143 = arith.constant dense<0.000000e+00> : vector<16x32xf32>
    %322 = tpu.matmul %319, %321, %cst_143 {dimension_numbers = #tpu.dot_dimension_numbers<[1], [0], [0], [1], [0, 0, 1, 1], [], []>} : vector<16x128xf32>, vector<128x32xf32>, vector<16x32xf32> -> vector<16x32xf32>
    %c1_144 = arith.constant 1 : index
    %c0_145 = arith.constant 0 : index
    %c0_146 = arith.constant 0 : index
    %323 = vector.load %arg13[%c1_144, %c0_145, %c0_146] : memref<2x1x32xf32, #tpu.memory_space<vmem>>, vector<1x1x32xf32>
    %324 = vector.shape_cast %323 : vector<1x1x32xf32> to vector<1x32xf32>
    %325 = vector.broadcast %324 : vector<1x32xf32> to vector<16x32xf32>
    %326 = arith.addf %322, %325 : vector<16x32xf32>
    %327 = arith.addf %278, %326 : vector<16x32xf32>
    %c0_147 = arith.constant 0 : index
    %c0_148 = arith.constant 0 : index
    %328 = vector.load %arg14[%c0_147, %c0_148] : memref<1x32xf32, #tpu.memory_space<vmem>>, vector<1x32xf32>
    %c0_149 = arith.constant 0 : index
    %c0_150 = arith.constant 0 : index
    %329 = vector.load %arg15[%c0_149, %c0_150] : memref<1x32xf32, #tpu.memory_space<vmem>>, vector<1x32xf32>
    %cst_151 = arith.constant dense<0.000000e+00> : vector<16xf32>
    %330 = vector.multi_reduction <add>, %327, %cst_151 [1] : vector<16x32xf32> to vector<16xf32>
    %331 = vector.shape_cast %330 : vector<16xf32> to vector<16x1xf32>
    %cst_152 = arith.constant 3.200000e+01 : f32
    %332 = vector.broadcast %cst_152 : f32 to vector<16x1xf32>
    %333 = arith.divf %331, %332 : vector<16x1xf32>
    %334 = vector.broadcast %333 : vector<16x1xf32> to vector<16x32xf32>
    %335 = arith.subf %327, %334 : vector<16x32xf32>
    %336 = arith.mulf %335, %335 : vector<16x32xf32>
    %cst_153 = arith.constant dense<0.000000e+00> : vector<16xf32>
    %337 = vector.multi_reduction <add>, %336, %cst_153 [1] : vector<16x32xf32> to vector<16xf32>
    %338 = vector.shape_cast %337 : vector<16xf32> to vector<16x1xf32>
    %cst_154 = arith.constant 3.200000e+01 : f32
    %339 = vector.broadcast %cst_154 : f32 to vector<16x1xf32>
    %340 = arith.divf %338, %339 : vector<16x1xf32>
    %341 = vector.broadcast %333 : vector<16x1xf32> to vector<16x32xf32>
    %342 = arith.subf %327, %341 : vector<16x32xf32>
    %cst_155 = arith.constant 9.99999974E-6 : f32
    %343 = vector.broadcast %cst_155 : f32 to vector<16x1xf32>
    %344 = arith.addf %340, %343 : vector<16x1xf32>
    %345 = math.rsqrt %344 : vector<16x1xf32>
    %346 = vector.broadcast %345 : vector<16x1xf32> to vector<16x32xf32>
    %347 = arith.mulf %342, %346 : vector<16x32xf32>
    %348 = vector.broadcast %328 : vector<1x32xf32> to vector<16x32xf32>
    %349 = arith.mulf %347, %348 : vector<16x32xf32>
    %350 = vector.broadcast %329 : vector<1x32xf32> to vector<16x32xf32>
    %351 = arith.addf %349, %350 : vector<16x32xf32>
    %c0_156 = arith.constant 0 : index
    %c0_157 = arith.constant 0 : index
    %352 = vector.load %arg16[%c0_156, %c0_157] : memref<32x128xf32, #tpu.memory_space<vmem>>, vector<32x128xf32>
    %cst_158 = arith.constant dense<0.000000e+00> : vector<16x128xf32>
    %353 = tpu.matmul %351, %352, %cst_158 {dimension_numbers = #tpu.dot_dimension_numbers<[1], [0], [0], [1], [0, 0, 1, 1], [], []>} : vector<16x32xf32>, vector<32x128xf32>, vector<16x128xf32> -> vector<16x128xf32>
    %c0_159 = arith.constant 0 : index
    %c0_160 = arith.constant 0 : index
    %354 = vector.load %arg17[%c0_159, %c0_160] : memref<16x128xf32, #tpu.memory_space<vmem>>, vector<16x128xf32>
    tpu.vector_store %arg17[%c0_159, %c0_160], %353 {strides = array<i32>} : memref<16x128xf32, #tpu.memory_space<vmem>>, vector<16x128xf32>,
    return
  }
}

</mosaic_0001>

<bundles_post_ra>
// kernel: gpt_forward.1
= control target key start
LH: loop header
LB: loop body
LE: loop exit
PB: predicated region body
PF: predicated region fallthrough
CT: control target
= control target key end

     0   :  { %vm62_vm0 = vcmask 261120   ;;  %vm204_vm1 = vcmask 64512   ;;  %s3477_s29 = smov 96   ;;  %vm292_vm2 = vcmask 130048   ;;  %s3478_s20 = smov 64   ;;  %vm1042_vm3 = vcmask 195584   ;;  %s4175_s0 = inlined_call_operand.vmem [shape: f32[16,32], index: 0, kind: input, shape index: {}]   ;;  %s4176_s4 = inlined_call_operand.vmem [shape: f32[2,32,96], index: 4, kind: input, shape index: {}]   ;;  %s4177_s2 = inlined_call_operand.vmem [shape: f32[2,1,32], index: 2, kind: input, shape index: {}]   ;;  %s4178_s3 = inlined_call_operand.vmem [shape: f32[2,1,32], index: 3, kind: input, shape index: {}]   ;;  %s4179_s5 = inlined_call_operand.vmem [shape: f32[2,1,96], index: 5, kind: input, shape index: {}]   ;;  %s4180_s1 = inlined_call_operand.vmem [shape: f32[16,16], index: 1, kind: input, shape index: {}]   ;;  %s4181_s6 = inlined_call_operand.vmem [shape: f32[2,32,32], index: 6, kind: input, shape index: {}]   ;;  %s4182_s7 = inlined_call_operand.vmem [shape: f32[2,1,32], index: 7, kind: input, shape index: {}]   ;;  %s4183_s10 = inlined_call_operand.vmem [shape: f32[2,32,128], index: 10, kind: input, shape index: {}]   ;;  %s4184_s12 = inlined_call_operand.vmem [shape: f32[2,128,32], index: 12, kind: input, shape index: {}]   ;;  %s4185_s8 = inlined_call_operand.vmem [shape: f32[2,1,32], index: 8, kind: input, shape index: {}]   ;;  %s4186_s9 = inlined_call_operand.vmem [shape: f32[2,1,32], index: 9, kind: input, shape index: {}]   ;;  %s4187_s11 = inlined_call_operand.vmem [shape: f32[2,1,128], index: 11, kind: input, shape index: {}]   ;;  %s4188_s13 = inlined_call_operand.vmem [shape: f32[2,1,32], index: 13, kind: input, shape index: {}]   ;;  %s4189_s16 = inlined_call_operand.vmem [shape: f32[32,128], index: 16, kind: input, shape index: {}]   ;;  %s4190_s14 = inlined_call_operand.vmem [shape: f32[1,32], index: 14, kind: input, shape index: {}]   ;;  %s4191_s15 = inlined_call_operand.vmem [shape: f32[1,32], index: 15, kind: input, shape index: {}]   ;;  %s4192_s17 = inlined_call_operand.vmem [shape: f32[16,128], index: 17, kind: output, shape index: {}]  }
   0x1   :  { %4211 = sst [smem:[#allocation2_spill]] %s4175_s0  ;;  %v2852_v25 = vld [vmem:[%s4177_s2] ss:$0 sm:$0xff]  ;;  %v3641_v42 = vld [vmem:[%s4180_s1 + $0x8] sm:$0xff]  ;;  %s3479_s21 = smov 88  }
   0x2   :  { %4212 = sst [smem:[#allocation3_spill]] %s4176_s4  ;;  %v2853_v27 = vld [vmem:[%s4178_s3] ss:$0 sm:$0xff]  ;;  %s3480_s22 = smov 120  }
   0x3   :  { %s4213_s26 = sld [smem:[#allocation2_spill]]  ;;  %v2854_v34 = vld [vmem:[%s4179_s5] ss:$0 sm:$0xff]  ;;  %s4207_s23 = smov 56  }
   0x4   :  { %s4214_s30 = sld [smem:[#allocation3_spill]]  ;;  %v3646_v45 = vld [vmem:[%s4180_s1] sm:$0xff]  ;;  %s3482_s24 = smov 80  }
   0x5   :  { %s3483_s25 = smov 112   ;;  %s4203_s27 = smov 72  }
   0x6   :  { %s4201_s28 = smov 104   ;;  %s4199_s0 = smov 40  }
   0x7   :  { %s4197_s18 = smov 8   ;;  %s4195_s19 = smov 16  }
   0x9   :  { %v3584_v0 = vld [vmem:[%s4213_s26] sm:$0xff]  ;;  %v3589_v1 = vld [vmem:[%s4213_s26 + $0x8] sm:$0xff]  ;;  %s4205_s26 = smov 48  }
   0xa   :  { %v63_v2 = vsel %vm62_vm0, %v3584_v0, 0.0  ;;  %v66_v3 = vsel %vm62_vm0, %v3589_v1, 0.0  ;;  %v109_v14 = vld [vmem:[%s4214_s30 + $0x18] sm:$0xff]  ;;  %v108_v15 = vld [vmem:[%s4214_s30 + $0x10] sm:$0xff]  ;;  %v107_v16 = vld [vmem:[%s4214_s30 + $0x8] sm:$0xff] }
   0xb   :  { %64 = vadd.xlane.f32.xlu0 %v63_v2  ;;  %3110 = vmatprep.subr.mxu1 %v109_v14  ;;  %v106_v17 = vld [vmem:[%s4214_s30] sm:$0xff] }
   0xc   :  { %3111 = vmatpush3.msra.mxu1 %v109_v14 }
   0xd   :  { %3112 = vmatprep.subr.mxu1 %v108_v15 }
   0xe   :  { %3113 = vmatpush3.msra.mxu1 %v108_v15 }
   0xf   :  { %67 = vadd.xlane.f32.xlu0 %v66_v3  ;;  %3114 = vmatprep.subr.mxu1 %v107_v16 }
  0x10   :  { %3115 = vmatpush3.msra.mxu1 %v107_v16 }
  0x11   :  { %3116 = vmatprep.subr.mxu1 %v106_v17 }
  0x12   :  { %3117 = vmatpush3.msra.mxu1 %v106_v17 }
  0x94   :  { %v65_v4 = vpop.xlane.xlu0 %64 }
  0x95   :  { %v70_v5 = vmul.f32 0.03125, %v65_v4 }
  0x97   :  { %v72_v6 = vsub.f32 %v3584_v0, %v70_v5 }
  0x98   :  { %v68_v7 = vpop.xlane.xlu0 %67 }
  0x99   :  { %v71_v8 = vmul.f32 0.03125, %v68_v7  ;;  %v74_v9 = vmul.f32 %v72_v6, %v72_v6 }
  0x9b   :  { %v73_v10 = vsub.f32 %v3589_v1, %v71_v8  ;;  %v76_v11 = vsel %vm62_vm0, %v74_v9, 0.0 }
  0x9c   :  { %77 = vadd.xlane.f32.xlu1 %v76_v11 }
  0x9d   :  { %v75_v12 = vmul.f32 %v73_v10, %v73_v10 }
  0x9f   :  { %v79_v13 = vsel %vm62_vm0, %v75_v12, 0.0 }
  0xa0   :  { %80 = vadd.xlane.f32.xlu1 %v79_v13 }
 0x125   :  { %v78_v18 = vpop.xlane.xlu1 %77 }
 0x126   :  { %v82_v19 = vmul.f32 0.03125, %v78_v18 }
 0x128   :  { %v84_v20 = vadd.f32 1e-05, %v82_v19 }
 0x129   :  { %v81_v21 = vpop.xlane.xlu1 %80 }
 0x12a   :  { %3383 = vrsqrt.f32 %v84_v20  ;;  %v83_v22 = vmul.f32 0.03125, %v81_v21 }
 0x12c   :  { %v85_v23 = vadd.f32 1e-05, %v83_v22 }
 0x12e   :  { %3385 = vrsqrt.f32 %v85_v23 }
 0x137   :  { %v3384_v24 = vpop.eup %3383 }
 0x138   :  { %v88_v26 = vmul.f32 %v3384_v24, %v72_v6 }
 0x13a   :  { %v96_v28 = vmul.f32 %v2852_v25, %v88_v26 }
 0x13b   :  { %v3386_v29 = vpop.eup %3385 }
 0x13c   :  { %v89_v30 = vmul.f32 %v3386_v29, %v73_v10  ;;  %v104_v31 = vadd.f32 %v2853_v27, %v96_v28 }
 0x13e   :  { %v97_v32 = vmul.f32 %v2852_v25, %v89_v30  ;;  %3118 = vmatprep.mubr.msk.f32.mxu1 %vm62_vm0, %v104_v31 }
 0x140   :  { %v105_v33 = vadd.f32 %v2853_v27, %v97_v32 }
 0x142   :  { %3119 = vmatmul.mubr.msk.f32.vlgmr.msra.gmra.mxu1 %vm62_vm0, %v105_v33 }
 0x202   :  { %v3120_v35 = vpop.f32.mrf.mxu1 }
 0x203   :  { %v3622_v36 = vadd.f32 %v3120_v35, %v2854_v34 }
 0x204   :  { %v189_v37 = vpop.f32.mrf.mxu1 }
 0x205   :  { %v3624_v38 = vadd.f32 %v2854_v34, %v189_v37  ;;  %202 = vrot.lane.b32.xlu0 %v3622_v36, %s3477_s29 }
 0x207   :  { %200 = vrot.lane.b32.xlu1 %v3624_v38, %s3477_s29  ;;  %3125 = vmatprep.mubr.msk.f32.mxu1 %vm204_vm1, %v3624_v38 }
 0x277   :  { %v203_v39 = vpop.permute.xlu0 %202 }
 0x278   :  { %3121 = vmatprep.subr.msk.mxu1 %vm204_vm1, %v203_v39 }
 0x279   :  { %3122 = vmatpush3.xpose.msk.msra.mxu1 %vm204_vm1, %v203_v39  ;;  %v201_v40 = vpop.permute.xlu1 %200 }
 0x27a   :  { %3123 = vmatprep.subr.msk.mxu1 %vm204_vm1, %v201_v40 }
 0x27d   :  { %3124 = vmatpush3.xpose.msk.msra.mxu1 %vm204_vm1, %v201_v40 }
 0x280   :  { %3126 = vmatmul.mubr.msk.f32.vlgmr.msra.gmra.mxu1 %vm204_vm1, %v3622_v36 }
 0x340   :  { %v3127_v41 = vpop.f32.mrf.mxu1 }
 0x341   :  { %v289_v43 = vmul.f32 0.35355338, %v3127_v41 }
 0x342   :  { %v279_v44 = vpop.f32.mrf.mxu1 }
 0x343   :  { %v288_v46 = vmul.f32 0.35355338, %v279_v44  ;;  %v291_v47 = vadd.f32 %v289_v43, %v3641_v42 }
 0x345   :  { %v296_v48 = vsel %vm292_vm2, %v291_v47, -inf  ;;  %v290_v49 = vadd.f32 %v288_v46, %v3646_v45 }
 0x346   :  { %297 = vmax.xlane.f32.xlu0 %v296_v48 }
 0x347   :  { %v293_v50 = vsel %vm292_vm2, %v290_v49, -inf }
 0x348   :  { %294 = vmax.xlane.f32.xlu1 %v293_v50 }
 0x3cf   :  { %v298_v51 = vpop.xlane.xlu0 %297 }
 0x3d0   :  { %v300_v52 = vsub.f32 %v291_v47, %v298_v51 }
 0x3d1   :  { %v295_v53 = vpop.xlane.xlu1 %294 }
 0x3d2   :  { %v303_v54 = vmul.f32 1.442695, %v300_v52  ;;  %v299_v55 = vsub.f32 %v290_v49, %v295_v53 }
 0x3d4   :  { %3387 = vpow2.f32 %v303_v54  ;;  %v301_v56 = vmul.f32 1.442695, %v299_v55 }
 0x3d6   :  { %3389 = vpow2.f32 %v301_v56 }
 0x3e1   :  { %v3388_v57 = vpop.eup %3387 }
 0x3e2   :  { %v308_v58 = vsel %vm292_vm2, %v3388_v57, 0.0 }
 0x3e3   :  { %v3390_v59 = vpop.eup %3389  ;;  %309 = vadd.xlane.f32.xlu1 %v308_v58 }
 0x3e4   :  { %v305_v60 = vsel %vm292_vm2, %v3390_v59, 0.0 }
 0x3e5   :  { %306 = vadd.xlane.f32.xlu0 %v305_v60 }
 0x3f4   :  { %315 = vrot.lane.b32.xlu1 %v3624_v38, %s3478_s20 }
 0x3f8   :  { %408 = vrot.lane.b32.xlu1 %v3622_v36, %s3479_s21 }
 0x3fb   :  { %317 = vrot.lane.b32.xlu0 %v3622_v36, %s3478_s20 }
 0x3fc   :  { %406 = vrot.lane.b32.xlu1 %v3624_v38, %s3479_s21 }
 0x3ff   :  { %402 = vrot.lane.b32.xlu0 %v3624_v38, %s3480_s22 }
 0x400   :  { %404 = vrot.lane.b32.xlu1 %v3622_v36, %s3480_s22 }
 0x46c   :  { %v310_v61 = vpop.xlane.xlu1 %309 }
 0x46d   :  { %3391 = vrcp.f32 %v310_v61 }
 0x46e   :  { %v307_v62 = vpop.xlane.xlu0 %306 }
 0x46f   :  { %3393 = vrcp.f32 %v307_v62 }
 0x470   :  { %v316_v63 = vpop.permute.xlu1 %315 }
 0x472   :  { %v318_v2 = vpop.permute.xlu0 %317 }
 0x473   :  { %3128 = vmatprep.subr.mxu1 %v318_v2 }
 0x474   :  { %3129 = vmatpush3.msra.mxu1 %v318_v2  ;;  %v409_v3 = vpop.permute.xlu1 %408 }
 0x475   :  { %3130 = vmatprep.subr.mxu1 %v316_v63 }
 0x476   :  { %3131 = vmatpush3.msra.mxu1 %v316_v63  ;;  %v403_v8 = vpop.permute.xlu0 %402 }
 0x477   :  { %3135 = vmatprep.subr.msk.mxu1 %vm204_vm1, %v409_v3 }
 0x478   :  { %v407_v9 = vpop.permute.xlu1 %406 }
 0x47a   :  { %v3392_v4 = vpop.eup %3391 }
 0x47b   :  { %v314_v7 = vmul.f32 %v3392_v4, %v3388_v57 }
 0x47c   :  { %v3394_v5 = vpop.eup %3393  ;;  %v405_v10 = vpop.permute.xlu1 %404 }
 0x47d   :  { %v313_v6 = vmul.f32 %v3394_v5, %v3390_v59 }
 0x47f   :  { %3132 = vmatprep.mubr.msk.f32.mxu1 %vm292_vm2, %v313_v6 }
 0x480   :  { %3133 = vmatmul.mubr.msk.f32.vlgmr.msra.gmra.mxu1 %vm292_vm2, %v314_v7 }
 0x481   :  { %3136 = vmatpush3.xpose.msk.msra.mxu1 %vm204_vm1, %v409_v3  ;;  %3139 = vmatprep.mubr.msk.f32.mxu1 %vm204_vm1, %v403_v8 }
 0x482   :  { %3137 = vmatprep.subr.msk.mxu1 %vm204_vm1, %v407_v9 }
 0x485   :  { %3138 = vmatpush3.xpose.msk.msra.mxu1 %vm204_vm1, %v407_v9 }
 0x488   :  { %3140 = vmatmul.mubr.msk.f32.vlgmr.msra.gmra.mxu1 %vm204_vm1, %v405_v10 }
 0x540   :  { %v3674_v11 = vpop.f32.mrf.mxu1 }
 0x542   :  { %v3676_v12 = vpop.f32.mrf.mxu1 }
 0x548   :  { %v3141_v13 = vpop.f32.mrf.mxu1 }
 0x549   :  { %v494_v14 = vmul.f32 0.35355338, %v3141_v13 }
 0x54a   :  { %v484_v15 = vpop.f32.mrf.mxu1 }
 0x54b   :  { %v493_v16 = vmul.f32 0.35355338, %v484_v15  ;;  %v496_v17 = vadd.f32 %v494_v14, %v3641_v42 }
 0x54d   :  { %v500_v18 = vsel %vm292_vm2, %v496_v17, -inf  ;;  %v495_v19 = vadd.f32 %v493_v16, %v3646_v45 }
 0x54e   :  { %501 = vmax.xlane.f32.xlu1 %v500_v18 }
 0x54f   :  { %v497_v20 = vsel %vm292_vm2, %v495_v19, -inf }
 0x550   :  { %498 = vmax.xlane.f32.xlu0 %v497_v20 }
 0x55f   :  { %519 = vrot.lane.b32.xlu1 %v3624_v38, %s4207_s23 }
 0x563   :  { %612 = vrot.lane.b32.xlu1 %v3622_v36, %s3482_s24 }
 0x567   :  { %610 = vrot.lane.b32.xlu1 %v3624_v38, %s3482_s24 }
 0x56b   :  { %608 = vrot.lane.b32.xlu1 %v3622_v36, %s3483_s25 }
 0x5d7   :  { %v502_v21 = vpop.xlane.xlu1 %501 }
 0x5d8   :  { %v504_v22 = vsub.f32 %v496_v17, %v502_v21 }
 0x5d9   :  { %v499_v23 = vpop.xlane.xlu0 %498 }
 0x5da   :  { %v507_v24 = vmul.f32 1.442695, %v504_v22  ;;  %v503_v25 = vsub.f32 %v495_v19, %v499_v23 }
 0x5db   :  { %v520_v33 = vpop.permute.xlu1 %519 }
 0x5dc   :  { %3395 = vpow2.f32 %v507_v24  ;;  %v505_v26 = vmul.f32 1.442695, %v503_v25 }
 0x5de   :  { %3397 = vpow2.f32 %v505_v26 }
 0x5df   :  { %v613_v35 = vpop.permute.xlu1 %612 }
 0x5e3   :  { %v611_v44 = vpop.permute.xlu1 %610 }
 0x5e7   :  { %v609_v46 = vpop.permute.xlu1 %608 }
 0x5e9   :  { %v3396_v27 = vpop.eup %3395 }
 0x5ea   :  { %v512_v28 = vsel %vm292_vm2, %v3396_v27, 0.0 }
 0x5eb   :  { %v3398_v29 = vpop.eup %3397  ;;  %513 = vadd.xlane.f32.xlu0 %v512_v28 }
 0x5ec   :  { %v509_v30 = vsel %vm292_vm2, %v3398_v29, 0.0 }
 0x5ef   :  { %510 = vadd.xlane.f32.xlu0 %v509_v30 }
 0x605   :  { %521 = vrot.lane.b32.xlu0 %v3622_v36, %s4207_s23  ;;  %s4221_s23 = smov 16  }
 0x609   :  { %606 = vrot.lane.b32.xlu0 %v3624_v38, %s3483_s25 }
 0x674   :  { %v514_v31 = vpop.xlane.xlu0 %513 }
 0x675   :  { %3399 = vrcp.f32 %v514_v31 }
 0x678   :  { %v511_v32 = vpop.xlane.xlu0 %510 }
 0x679   :  { %3401 = vrcp.f32 %v511_v32 }
 0x67c   :  { %v522_v34 = vpop.permute.xlu0 %521 }
 0x67d   :  { %3142 = vmatprep.subr.mxu0 %v522_v34 }
 0x67e   :  { %3143 = vmatpush3.msra.mxu0 %v522_v34 }
 0x67f   :  { %3144 = vmatprep.subr.mxu0 %v520_v33 }
 0x680   :  { %3145 = vmatpush3.msra.mxu0 %v520_v33  ;;  %v607_v43 = vpop.permute.xlu0 %606 }
 0x681   :  { %3149 = vmatprep.subr.msk.mxu0 %vm204_vm1, %v613_v35 }
 0x682   :  { %v3400_v37 = vpop.eup %3399 }
 0x683   :  { %v518_v41 = vmul.f32 %v3400_v37, %v3396_v27 }
 0x686   :  { %v3402_v39 = vpop.eup %3401 }
 0x687   :  { %v517_v40 = vmul.f32 %v3402_v39, %v3398_v29 }
 0x689   :  { %3146 = vmatprep.mubr.msk.f32.mxu0 %vm292_vm2, %v517_v40 }
 0x68a   :  { %3147 = vmatmul.mubr.msk.f32.vlgmr.msra.gmra.mxu0 %vm292_vm2, %v518_v41 }
 0x68b   :  { %3150 = vmatpush3.xpose.msk.msra.mxu0 %vm204_vm1, %v613_v35  ;;  %3153 = vmatprep.mubr.msk.f32.mxu0 %vm204_vm1, %v607_v43 }
 0x68c   :  { %3151 = vmatprep.subr.msk.mxu0 %vm204_vm1, %v611_v44 }
 0x68f   :  { %3152 = vmatpush3.xpose.msk.msra.mxu0 %vm204_vm1, %v611_v44 }
 0x692   :  { %3154 = vmatmul.mubr.msk.f32.vlgmr.msra.gmra.mxu0 %vm204_vm1, %v609_v46 }
 0x74a   :  { %v3704_v47 = vpop.f32.mrf.mxu0 }
 0x74c   :  { %v3706_v48 = vpop.f32.mrf.mxu0 }
 0x752   :  { %v3155_v49 = vpop.f32.mrf.mxu0 }
 0x753   :  { %v698_v50 = vmul.f32 0.35355338, %v3155_v49 }
 0x754   :  { %v688_v51 = vpop.f32.mrf.mxu0 }
 0x755   :  { %v697_v52 = vmul.f32 0.35355338, %v688_v51  ;;  %v700_v53 = vadd.f32 %v698_v50, %v3641_v42  ;;  %v1047_v50 = vld [vmem:[%s4181_s6 + $0x10] sm:$0xff]  ;;  %v1046_v51 = vld [vmem:[%s4181_s6 + $0x8] sm:$0xff] }
 0x757   :  { %v704_v54 = vsel %vm292_vm2, %v700_v53, -inf  ;;  %v699_v55 = vadd.f32 %v697_v52, %v3646_v45  ;;  %v1045_v52 = vld [vmem:[%s4181_s6] sm:$0xff] }
 0x758   :  { %705 = vmax.xlane.f32.xlu1 %v704_v54 }
 0x759   :  { %v701_v56 = vsel %vm292_vm2, %v699_v55, -inf }
 0x75a   :  { %702 = vmax.xlane.f32.xlu0 %v701_v56 }
 0x769   :  { %723 = vrot.lane.b32.xlu1 %v3624_v38, %s4205_s26 }
 0x76d   :  { %816 = vrot.lane.b32.xlu1 %v3622_v36, %s4203_s27 }
 0x771   :  { %814 = vrot.lane.b32.xlu1 %v3624_v38, %s4203_s27 }
 0x775   :  { %812 = vrot.lane.b32.xlu1 %v3622_v36, %s4201_s28 }
 0x7e1   :  { %v706_v57 = vpop.xlane.xlu1 %705 }
 0x7e2   :  { %v708_v58 = vsub.f32 %v700_v53, %v706_v57 }
 0x7e3   :  { %v703_v59 = vpop.xlane.xlu0 %702 }
 0x7e4   :  { %v711_v60 = vmul.f32 1.442695, %v708_v58  ;;  %v707_v61 = vsub.f32 %v699_v55, %v703_v59 }
 0x7e5   :  { %v724_v7 = vpop.permute.xlu1 %723 }
 0x7e6   :  { %3403 = vpow2.f32 %v711_v60  ;;  %v709_v62 = vmul.f32 1.442695, %v707_v61 }
 0x7e8   :  { %3405 = vpow2.f32 %v709_v62 }
 0x7e9   :  { %v817_v9 = vpop.permute.xlu1 %816 }
 0x7ed   :  { %v815_v17 = vpop.permute.xlu1 %814 }
 0x7f1   :  { %v813_v18 = vpop.permute.xlu1 %812 }
 0x7f3   :  { %v3404_v63 = vpop.eup %3403 }
 0x7f4   :  { %v716_v2 = vsel %vm292_vm2, %v3404_v63, 0.0 }
 0x7f5   :  { %v3406_v3 = vpop.eup %3405  ;;  %717 = vadd.xlane.f32.xlu0 %v716_v2 }
 0x7f6   :  { %v713_v4 = vsel %vm292_vm2, %v3406_v3, 0.0 }
 0x7f9   :  { %714 = vadd.xlane.f32.xlu0 %v713_v4 }
 0x80f   :  { %725 = vrot.lane.b32.xlu0 %v3622_v36, %s4205_s26 }
 0x813   :  { %810 = vrot.lane.b32.xlu0 %v3624_v38, %s4201_s28 }
 0x87e   :  { %v718_v5 = vpop.xlane.xlu0 %717 }
 0x87f   :  { %3407 = vrcp.f32 %v718_v5 }
 0x882   :  { %v715_v6 = vpop.xlane.xlu0 %714 }
 0x883   :  { %3409 = vrcp.f32 %v715_v6 }
 0x886   :  { %v726_v8 = vpop.permute.xlu0 %725 }
 0x887   :  { %3156 = vmatprep.subr.mxu1 %v726_v8 }
 0x888   :  { %3157 = vmatpush3.msra.mxu1 %v726_v8 }
 0x889   :  { %3158 = vmatprep.subr.mxu1 %v724_v7 }
 0x88a   :  { %3159 = vmatpush3.msra.mxu1 %v724_v7  ;;  %v811_v16 = vpop.permute.xlu0 %810 }
 0x88b   :  { %3163 = vmatprep.subr.msk.mxu1 %vm204_vm1, %v817_v9 }
 0x88c   :  { %v3408_v10 = vpop.eup %3407 }
 0x88d   :  { %v722_v15 = vmul.f32 %v3408_v10, %v3404_v63 }
 0x890   :  { %v3410_v13 = vpop.eup %3409 }
 0x891   :  { %v721_v14 = vmul.f32 %v3410_v13, %v3406_v3 }
 0x893   :  { %3160 = vmatprep.mubr.msk.f32.mxu1 %vm292_vm2, %v721_v14 }
 0x894   :  { %3161 = vmatmul.mubr.msk.f32.vlgmr.msra.gmra.mxu1 %vm292_vm2, %v722_v15 }
 0x895   :  { %3164 = vmatpush3.xpose.msk.msra.mxu1 %vm204_vm1, %v817_v9  ;;  %3167 = vmatprep.mubr.msk.f32.mxu1 %vm204_vm1, %v811_v16 }
 0x896   :  { %3165 = vmatprep.subr.msk.mxu1 %vm204_vm1, %v815_v17 }
 0x899   :  { %3166 = vmatpush3.xpose.msk.msra.mxu1 %vm204_vm1, %v815_v17 }
 0x89c   :  { %3168 = vmatmul.mubr.msk.f32.vlgmr.msra.gmra.mxu1 %vm204_vm1, %v813_v18 }
 0x954   :  { %v3162_v19 = vpop.f32.mrf.mxu1 }
 0x956   :  { %v801_v20 = vpop.f32.mrf.mxu1 }
 0x95c   :  { %v3169_v21 = vpop.f32.mrf.mxu1 }
 0x95d   :  { %v902_v22 = vmul.f32 0.35355338, %v3169_v21 }
 0x95e   :  { %v892_v23 = vpop.f32.mrf.mxu1 }
 0x95f   :  { %v901_v24 = vmul.f32 0.35355338, %v892_v23  ;;  %v904_v25 = vadd.f32 %v902_v22, %v3641_v42  ;;  %v1186_v22 = vld [vmem:[%s4183_s10 + $0x18] sm:$0xff]  ;;  %v1185_v23 = vld [vmem:[%s4183_s10 + $0x10] sm:$0xff] }
 0x960   :  { %3188 = vmatprep.subr.mxu1 %v1186_v22 }
 0x961   :  { %v908_v26 = vsel %vm292_vm2, %v904_v25, -inf  ;;  %v903_v27 = vadd.f32 %v901_v24, %v3646_v45  ;;  %3189 = vmatpush3.msra.mxu1 %v1186_v22  ;;  %v1184_v24 = vld [vmem:[%s4183_s10 + $0x8] sm:$0xff] }
 0x962   :  { %909 = vmax.xlane.f32.xlu1 %v908_v26  ;;  %3190 = vmatprep.subr.mxu1 %v1185_v23  ;;  %v1300_v26 = vld [vmem:[%s4184_s12 + $0x78] sm:$0xff] }
 0x963   :  { %v905_v28 = vsel %vm292_vm2, %v903_v27, -inf  ;;  %3191 = vmatpush3.msra.mxu1 %v1185_v23 }
 0x964   :  { %906 = vmax.xlane.f32.xlu0 %v905_v28  ;;  %3192 = vmatprep.subr.mxu1 %v1184_v24  ;;  %v1298_v28 = vld [vmem:[%s4184_s12 + $0x68] sm:$0xff] }
 0x965   :  { %3193 = vmatpush3.msra.mxu1 %v1184_v24 }
 0x973   :  { %927 = vrot.lane.b32.xlu1 %v3624_v38, %s4199_s0 }
 0x977   :  { %1016 = vrot.lane.b32.xlu1 %v3706_v48, %s4197_s18 }
 0x97b   :  { %1018 = vrot.lane.b32.xlu1 %v3704_v47, %s4197_s18 }
 0x97f   :  { %1026 = vrot.lane.b32.xlu1 %v3162_v19, %s4195_s19 }
 0x9eb   :  { %v910_v29 = vpop.xlane.xlu1 %909 }
 0x9ec   :  { %v912_v30 = vsub.f32 %v904_v25, %v910_v29  ;;  %v1183_v25 = vld [vmem:[%s4183_s10] sm:$0xff] }
 0x9ed   :  { %v907_v31 = vpop.xlane.xlu0 %906  ;;  %3194 = vmatprep.subr.mxu1 %v1183_v25 }
 0x9ee   :  { %v915_v32 = vmul.f32 1.442695, %v912_v30  ;;  %v911_v33 = vsub.f32 %v903_v27, %v907_v31  ;;  %3195 = vmatpush3.msra.mxu1 %v1183_v25  ;;  %v1299_v27 = vld [vmem:[%s4184_s12 + $0x70] sm:$0xff] }
 0x9ef   :  { %v928_v44 = vpop.permute.xlu1 %927 }
 0x9f0   :  { %3411 = vpow2.f32 %v915_v32  ;;  %v913_v34 = vmul.f32 1.442695, %v911_v33 }
 0x9f2   :  { %3413 = vpow2.f32 %v913_v34 }
 0x9f3   :  { %v1017_v55 = vpop.permute.xlu1 %1016 }
 0x9f4   :  { %v1038_v59 = vsel %vm204_vm1, %v3676_v12, %v1017_v55  ;;  %v2881_v12 = vld [vmem:[%s4182_s7] ss:$0 sm:$0xff] }
 0x9f5   :  { %v1289_v55 = vld [vmem:[%s4184_s12 + $0x20] sm:$0xff] }
 0x9f7   :  { %v1019_v56 = vpop.permute.xlu1 %1018 }
 0x9f8   :  { %v1039_v61 = vsel %vm204_vm1, %v3674_v11, %v1019_v56  ;;  %v1288_v56 = vld [vmem:[%s4184_s12 + $0x18] sm:$0xff] }
 0x9fb   :  { %v1027_v57 = vpop.permute.xlu1 %1026 }
 0x9fc   :  { %v1041_v2 = vsel %vm292_vm2, %v1039_v61, %v1027_v57  ;;  %v1287_v57 = vld [vmem:[%s4184_s12 + $0x10] sm:$0xff] }
 0x9fd   :  { %v3412_v35 = vpop.eup %3411 }
 0x9fe   :  { %v920_v38 = vsel %vm292_vm2, %v3412_v35, 0.0 }
 0x9ff   :  { %v3414_v37 = vpop.eup %3413  ;;  %921 = vadd.xlane.f32.xlu0 %v920_v38  ;;  %v2884_v38 = vld [vmem:[%s4185_s8] ss:$0 sm:$0xff] }
 0xa00   :  { %v917_v39 = vsel %vm292_vm2, %v3414_v37, 0.0 }
 0xa03   :  { %918 = vadd.xlane.f32.xlu0 %v917_v39  ;;  %v2885_v39 = vld [vmem:[%s4186_s9] ss:$0 sm:$0xff] }
 0xa19   :  { %929 = vrot.lane.b32.xlu0 %v3622_v36, %s4199_s0  ;;  %v1048_v36 = vld [vmem:[%s4181_s6 + $0x18] sm:$0xff] }
 0xa1d   :  { %1024 = vrot.lane.b32.xlu0 %v801_v20, %s4195_s19  ;;  %s4209_s19 = smov 24  }
 0xa88   :  { %v922_v40 = vpop.xlane.xlu0 %921 }
 0xa89   :  { %3415 = vrcp.f32 %v922_v40 }
 0xa8c   :  { %v919_v41 = vpop.xlane.xlu0 %918 }
 0xa8d   :  { %3417 = vrcp.f32 %v919_v41 }
 0xa90   :  { %v930_v43 = vpop.permute.xlu0 %929 }
 0xa91   :  { %3170 = vmatprep.subr.mxu0 %v930_v43 }
 0xa92   :  { %3171 = vmatpush3.msra.mxu0 %v930_v43 }
 0xa93   :  { %3172 = vmatprep.subr.mxu0 %v928_v44 }
 0xa94   :  { %3173 = vmatpush3.msra.mxu0 %v928_v44  ;;  %v1025_v58 = vpop.permute.xlu0 %1024 }
 0xa95   :  { %3177 = vmatprep.subr.mxu0 %v1048_v36  ;;  %v1040_v62 = vsel %vm292_vm2, %v1038_v59, %v1025_v58  ;;  %v1286_v58 = vld [vmem:[%s4184_s12 + $0x8] sm:$0xff]  ;;  %v1285_v59 = vld [vmem:[%s4184_s12] sm:$0xff] }
 0xa96   :  { %v3416_v46 = vpop.eup %3415 }
 0xa97   :  { %v926_v49 = vmul.f32 %v3416_v46, %v3412_v35 }
 0xa9a   :  { %v3418_v47 = vpop.eup %3417 }
 0xa9b   :  { %v925_v48 = vmul.f32 %v3418_v47, %v3414_v37 }
 0xa9d   :  { %3174 = vmatprep.mubr.msk.f32.mxu0 %vm292_vm2, %v925_v48  ;;  %v1297_v48 = vld [vmem:[%s4184_s12 + $0x60] sm:$0xff] }
 0xa9e   :  { %3175 = vmatmul.mubr.msk.f32.vlgmr.msra.gmra.mxu0 %vm292_vm2, %v926_v49  ;;  %v1296_v49 = vld [vmem:[%s4184_s12 + $0x58] sm:$0xff] }
 0xa9f   :  { %3178 = vmatpush3.msra.mxu0 %v1048_v36  ;;  %v1295_v36 = vld [vmem:[%s4184_s12 + $0x50] sm:$0xff] }
 0xaa0   :  { %3179 = vmatprep.subr.mxu0 %v1047_v50 }
 0xaa1   :  { %3180 = vmatpush3.msra.mxu0 %v1047_v50  ;;  %v1294_v50 = vld [vmem:[%s4184_s12 + $0x48] sm:$0xff] }
 0xaa2   :  { %3181 = vmatprep.subr.mxu0 %v1046_v51 }
 0xaa3   :  { %3182 = vmatpush3.msra.mxu0 %v1046_v51  ;;  %v1293_v51 = vld [vmem:[%s4184_s12 + $0x40] sm:$0xff] }
 0xaa4   :  { %3183 = vmatprep.subr.mxu0 %v1045_v52 }
 0xaa5   :  { %3184 = vmatpush3.msra.mxu0 %v1045_v52  ;;  %v1292_v52 = vld [vmem:[%s4184_s12 + $0x38] sm:$0xff] }
 0xaa6   :  { %3199 = vmatprep.subr.mxu0 %v1300_v26 }
 0xb5e   :  { %v3176_v53 = vpop.f32.mrf.mxu0 }
 0xb5f   :  { %1034 = vrot.lane.b32.xlu1 %v3176_v53, %s4209_s19  ;;  %v1291_v53 = vld [vmem:[%s4184_s12 + $0x30] sm:$0xff] }
 0xb60   :  { %v1005_v54 = vpop.f32.mrf.mxu0 }
 0xb61   :  { %1032 = vrot.lane.b32.xlu0 %v1005_v54, %s4209_s19  ;;  %v1290_v54 = vld [vmem:[%s4184_s12 + $0x28] sm:$0xff] }
 0xbd1   :  { %v1035_v60 = vpop.permute.xlu1 %1034 }
 0xbd2   :  { %v1044_v4 = vsel %vm1042_vm3, %v1041_v2, %v1035_v60  ;;  %v2886_v60 = vld [vmem:[%s4187_s11] ss:$0 sm:$0xff] }
 0xbd3   :  { %v1033_v63 = vpop.permute.xlu0 %1032 }
 0xbd4   :  { %v1043_v3 = vsel %vm1042_vm3, %v1040_v62, %v1033_v63 }
 0xbd5   :  { %3185 = vmatprep.mubr.msk.f32.mxu0 %vm62_vm0, %v1043_v3 }
 0xbd6   :  { %3186 = vmatmul.mubr.msk.f32.vlgmr.msra.gmra.mxu0 %vm62_vm0, %v1044_v4 }
 0xbd7   :  { %3200 = vmatpush3.msra.mxu0 %v1300_v26 }
 0xbd8   :  { %3201 = vmatprep.subr.mxu0 %v1299_v27 }
 0xbd9   :  { %3202 = vmatpush3.msra.mxu0 %v1299_v27 }
 0xbda   :  { %3203 = vmatprep.subr.mxu0 %v1298_v28 }
 0xbdb   :  { %3204 = vmatpush3.msra.mxu0 %v1298_v28 }
 0xbdc   :  { %3205 = vmatprep.subr.mxu0 %v1297_v48 }
 0xbdd   :  { %3206 = vmatpush3.msra.mxu0 %v1297_v48 }
 0xbde   :  { %3207 = vmatprep.subr.mxu0 %v1296_v49 }
 0xbdf   :  { %3208 = vmatpush3.msra.mxu0 %v1296_v49 }
 0xbe0   :  { %3209 = vmatprep.subr.mxu0 %v1295_v36 }
 0xbe1   :  { %3210 = vmatpush3.msra.mxu0 %v1295_v36 }
 0xbe2   :  { %3211 = vmatprep.subr.mxu0 %v1294_v50 }
 0xbe3   :  { %3212 = vmatpush3.msra.mxu0 %v1294_v50 }
 0xbe4   :  { %3213 = vmatprep.subr.mxu0 %v1293_v51 }
 0xbe5   :  { %3214 = vmatpush3.msra.mxu0 %v1293_v51 }
 0xbe6   :  { %3215 = vmatprep.subr.mxu0 %v1292_v52 }
 0xbe7   :  { %3216 = vmatpush3.msra.mxu0 %v1292_v52  ;;  %v2899_v52 = vld [vmem:[%s4179_s5 + $0x1] ss:$0 sm:$0xff] }
 0xbe8   :  { %3217 = vmatprep.subr.mxu0 %v1291_v53 }
 0xbe9   :  { %3218 = vmatpush3.msra.mxu0 %v1291_v53 }
 0xbea   :  { %3219 = vmatprep.subr.mxu0 %v1290_v54 }
 0xbeb   :  { %3220 = vmatpush3.msra.mxu0 %v1290_v54 }
 0xbec   :  { %3221 = vmatprep.subr.mxu0 %v1289_v55 }
 0xbed   :  { %3222 = vmatpush3.msra.mxu0 %v1289_v55 }
 0xbee   :  { %3223 = vmatprep.subr.mxu0 %v1288_v56 }
 0xbef   :  { %3224 = vmatpush3.msra.mxu0 %v1288_v56 }
 0xbf0   :  { %3225 = vmatprep.subr.mxu0 %v1287_v57 }
 0xbf1   :  { %3226 = vmatpush3.msra.mxu0 %v1287_v57 }
 0xbf2   :  { %3227 = vmatprep.subr.mxu0 %v1286_v58 }
 0xbf3   :  { %3228 = vmatpush3.msra.mxu0 %v1286_v58 }
 0xbf4   :  { %3229 = vmatprep.subr.mxu0 %v1285_v59 }
 0xbf5   :  { %3230 = vmatpush3.msra.mxu0 %v1285_v59 }
 0xc96   :  { %v3187_v5 = vpop.f32.mrf.mxu0 }
 0xc97   :  { %v1134_v6 = vadd.f32 %v3187_v5, %v2881_v12 }
 0xc98   :  { %v1128_v11 = vpop.f32.mrf.mxu0 }
 0xc99   :  { %v3780_v7 = vadd.f32 %v1134_v6, %v3589_v1  ;;  %v1129_v8 = vadd.f32 %v2881_v12, %v1128_v11 }
 0xc9b   :  { %v3783_v9 = vadd.f32 %v1129_v8, %v3584_v0  ;;  %v1144_v10 = vsel %vm62_vm0, %v3780_v7, 0.0 }
 0xc9c   :  { %1145 = vadd.xlane.f32.xlu1 %v1144_v10 }
 0xc9d   :  { %v1141_v13 = vsel %vm62_vm0, %v3783_v9, 0.0 }
 0xc9e   :  { %1142 = vadd.xlane.f32.xlu0 %v1141_v13 }
 0xd25   :  { %v1146_v14 = vpop.xlane.xlu1 %1145 }
 0xd26   :  { %v1148_v15 = vmul.f32 0.03125, %v1146_v14 }
 0xd27   :  { %v1143_v16 = vpop.xlane.xlu0 %1142 }
 0xd28   :  { %v1147_v17 = vmul.f32 0.03125, %v1143_v16  ;;  %v1150_v18 = vsub.f32 %v3780_v7, %v1148_v15  ;;  %v2889_v15 = vld [vmem:[%s4188_s13] ss:$0 sm:$0xff] }
 0xd2a   :  { %v1149_v1 = vsub.f32 %v3783_v9, %v1147_v17  ;;  %v1152_v20 = vmul.f32 %v1150_v18, %v1150_v18 }
 0xd2c   :  { %v1151_v19 = vmul.f32 %v1149_v1, %v1149_v1  ;;  %v1156_v21 = vsel %vm62_vm0, %v1152_v20, 0.0 }
 0xd2e   :  { %v1153_v0 = vsel %vm62_vm0, %v1151_v19, 0.0 }
 0xd2f   :  { %1154 = vadd.xlane.f32.xlu0 %v1153_v0 }
 0xd33   :  { %1157 = vadd.xlane.f32.xlu0 %v1156_v21 }
 0xdb8   :  { %v1155_v29 = vpop.xlane.xlu0 %1154 }
 0xdb9   :  { %v1159_v30 = vmul.f32 0.03125, %v1155_v29 }
 0xdbb   :  { %v1161_v31 = vadd.f32 1e-05, %v1159_v30  ;;  %v2897_v30 = vld [vmem:[%s4214_s30 + $0x38] sm:$0xff] }
 0xdbc   :  { %v1158_v32 = vpop.xlane.xlu0 %1157  ;;  %3234 = vmatprep.subr.mxu1 %v2897_v30 }
 0xdbd   :  { %3419 = vrsqrt.f32 %v1161_v31  ;;  %v1160_v33 = vmul.f32 0.03125, %v1158_v32  ;;  %v2896_v31 = vld [vmem:[%s4214_s30 + $0x30] sm:$0xff]  ;;  %v2895_v32 = vld [vmem:[%s4214_s30 + $0x28] sm:$0xff] }
 0xdbf   :  { %v1162_v34 = vadd.f32 1e-05, %v1160_v33  ;;  %v2894_v33 = vld [vmem:[%s4214_s30 + $0x20] sm:$0xff] }
 0xdc1   :  { %3421 = vrsqrt.f32 %v1162_v34 }
 0xdca   :  { %v3420_v35 = vpop.eup %3419 }
 0xdcb   :  { %v1165_v37 = vmul.f32 %v3420_v35, %v1149_v1 }
 0xdcd   :  { %v1173_v40 = vmul.f32 %v2884_v38, %v1165_v37 }
 0xdce   :  { %v3422_v41 = vpop.eup %3421 }
 0xdcf   :  { %v1166_v43 = vmul.f32 %v3422_v41, %v1150_v18  ;;  %v1181_v44 = vadd.f32 %v2885_v39, %v1173_v40 }
 0xdd1   :  { %v1174_v46 = vmul.f32 %v2884_v38, %v1166_v43  ;;  %3196 = vmatprep.mubr.msk.f32.mxu1 %vm62_vm0, %v1181_v44  ;;  %v2892_v43 = vld [vmem:[%s4177_s2 + $0x1] ss:$0 sm:$0xff]  ;;  %s4222_s2 = smov 24  }
 0xdd3   :  { %v1182_v47 = vadd.f32 %v2885_v39, %v1174_v46 }
 0xdd5   :  { %3197 = vmatmul.mubr.msk.f32.vlgmr.msra.gmra.mxu1 %vm62_vm0, %v1182_v47  ;;  %v2893_v47 = vld [vmem:[%s4178_s3 + $0x1] ss:$0 sm:$0xff] }
 0xdd6   :  { %3235 = vmatpush3.msra.mxu1 %v2897_v30 }
 0xdd7   :  { %3236 = vmatprep.subr.mxu1 %v2896_v31 }
 0xdd8   :  { %3237 = vmatpush3.msra.mxu1 %v2896_v31 }
 0xdd9   :  { %3238 = vmatprep.subr.mxu1 %v2895_v32 }
 0xdda   :  { %3239 = vmatpush3.msra.mxu1 %v2895_v32 }
 0xddb   :  { %3240 = vmatprep.subr.mxu1 %v2894_v33 }
 0xddc   :  { %3241 = vmatpush3.msra.mxu1 %v2894_v33 }
 0xe95   :  { %v3198_v61 = vpop.f32.mrf.mxu1 }
 0xe96   :  { %v1272_v62 = vadd.f32 %v3198_v61, %v2886_v60 }
 0xe97   :  { %v1266_v63 = vpop.f32.mrf.mxu1 }
 0xe98   :  { %v1278_v2 = vmul.f32 0.70710677, %v1272_v62  ;;  %v1267_v3 = vadd.f32 %v2886_v60, %v1266_v63  ;;  %v1276_v10 = vmul.f32 0.5, %v1272_v62 }
 0xe9a   :  { %3423 = verf.f32 %v1278_v2  ;;  %v1277_v4 = vmul.f32 0.70710677, %v1267_v3  ;;  %v1275_v11 = vmul.f32 0.5, %v1267_v3 }
 0xe9c   :  { %3425 = verf.f32 %v1277_v4 }
 0xea7   :  { %v3424_v12 = vpop.eup %3423 }
 0xea8   :  { %v1282_v6 = vadd.f32 1.0, %v3424_v12 }
 0xea9   :  { %v3426_v5 = vpop.eup %3425 }
 0xeaa   :  { %v1281_v8 = vadd.f32 1.0, %v3426_v5  ;;  %v1284_v14 = vmul.f32 %v1282_v6, %v1276_v10 }
 0xeac   :  { %v1283_v13 = vmul.f32 %v1281_v8, %v1275_v11 }
 0xeae   :  { %3231 = vmatprep.mubr.f32.mxu0 %v1283_v13 }
 0xeaf   :  { %3232 = vmatmul.mubr.f32.vlgmr.msra.gmra.mxu0 %v1284_v14 }
 0xf6f   :  { %v3233_v16 = vpop.f32.mrf.mxu0 }
 0xf70   :  { %v1380_v17 = vadd.f32 %v3233_v16, %v2889_v15 }
 0xf71   :  { %v1374_v18 = vpop.f32.mrf.mxu0 }
 0xf72   :  { %v3868_v1 = vadd.f32 %v1380_v17, %v3780_v7  ;;  %v1375_v19 = vadd.f32 %v2889_v15, %v1374_v18 }
 0xf74   :  { %v3871_v0 = vadd.f32 %v1375_v19, %v3783_v9  ;;  %v1392_v20 = vsel %vm62_vm0, %v3868_v1, 0.0 }
 0xf75   :  { %1393 = vadd.xlane.f32.xlu1 %v1392_v20 }
 0xf76   :  { %v1389_v21 = vsel %vm62_vm0, %v3871_v0, 0.0 }
 0xf77   :  { %1390 = vadd.xlane.f32.xlu0 %v1389_v21 }
 0xffe   :  { %v1394_v22 = vpop.xlane.xlu1 %1393 }
 0xfff   :  { %v1396_v23 = vmul.f32 0.03125, %v1394_v22 }
0x1000   :  { %v1391_v24 = vpop.xlane.xlu0 %1390 }
0x1001   :  { %v1398_v25 = vsub.f32 %v3868_v1, %v1396_v23  ;;  %v1395_v26 = vmul.f32 0.03125, %v1391_v24 }
0x1003   :  { %v1397_v7 = vsub.f32 %v3871_v0, %v1395_v26  ;;  %v1400_v27 = vmul.f32 %v1398_v25, %v1398_v25 }
0x1005   :  { %v1404_v9 = vsel %vm62_vm0, %v1400_v27, 0.0  ;;  %v1399_v28 = vmul.f32 %v1397_v7, %v1397_v7 }
0x1006   :  { %1405 = vadd.xlane.f32.xlu1 %v1404_v9 }
0x1007   :  { %v1401_v29 = vsel %vm62_vm0, %v1399_v28, 0.0 }
0x1008   :  { %1402 = vadd.xlane.f32.xlu0 %v1401_v29 }
0x108f   :  { %v1406_v34 = vpop.xlane.xlu1 %1405 }
0x1090   :  { %v1408_v35 = vmul.f32 0.03125, %v1406_v34 }
0x1091   :  { %v1403_v38 = vpop.xlane.xlu0 %1402 }
0x1092   :  { %v1410_v37 = vadd.f32 1e-05, %v1408_v35  ;;  %v1407_v39 = vmul.f32 0.03125, %v1403_v38 }
0x1094   :  { %3427 = vrsqrt.f32 %v1410_v37  ;;  %v1409_v40 = vadd.f32 1e-05, %v1407_v39  ;;  %v3967_v39 = vld [vmem:[%s4180_s1 + $0x8] sm:$0xff] }
0x1096   :  { %3429 = vrsqrt.f32 %v1409_v40 }
0x10a1   :  { %v3428_v41 = vpop.eup %3427 }
0x10a2   :  { %v1414_v44 = vmul.f32 %v3428_v41, %v1398_v25 }
0x10a3   :  { %v3430_v46 = vpop.eup %3429 }
0x10a4   :  { %v1413_v48 = vmul.f32 %v3430_v46, %v1397_v7  ;;  %v1422_v49 = vmul.f32 %v2892_v43, %v1414_v44 }
0x10a6   :  { %v1421_v36 = vmul.f32 %v2892_v43, %v1413_v48  ;;  %v1430_v50 = vadd.f32 %v2893_v47, %v1422_v49  ;;  %v3974_v43 = vld [vmem:[%s4180_s1] sm:$0xff]  ;;  %s4215_s1 = smov 56  }
0x10a8   :  { %v1429_v51 = vadd.f32 %v2893_v47, %v1421_v36 }
0x10aa   :  { %3242 = vmatprep.mubr.msk.f32.mxu1 %vm62_vm0, %v1429_v51 }
0x10ab   :  { %3243 = vmatmul.mubr.msk.f32.vlgmr.msra.gmra.mxu1 %vm62_vm0, %v1430_v50 }
0x116b   :  { %v3244_v53 = vpop.f32.mrf.mxu1 }
0x116c   :  { %v3904_v54 = vadd.f32 %v3244_v53, %v2899_v52 }
0x116d   :  { %v1516_v55 = vpop.f32.mrf.mxu1 }
0x116e   :  { %v3906_v56 = vadd.f32 %v2899_v52, %v1516_v55  ;;  %1529 = vrot.lane.b32.xlu0 %v3904_v54, %s3477_s29 }
0x1170   :  { %1527 = vrot.lane.b32.xlu1 %v3906_v56, %s3477_s29  ;;  %3249 = vmatprep.mubr.msk.f32.mxu1 %vm204_vm1, %v3906_v56 }
0x11e0   :  { %v1530_v57 = vpop.permute.xlu0 %1529 }
0x11e1   :  { %3245 = vmatprep.subr.msk.mxu1 %vm204_vm1, %v1530_v57 }
0x11e2   :  { %3246 = vmatpush3.xpose.msk.msra.mxu1 %vm204_vm1, %v1530_v57  ;;  %v1528_v58 = vpop.permute.xlu1 %1527 }
0x11e3   :  { %3247 = vmatprep.subr.msk.mxu1 %vm204_vm1, %v1528_v58 }
0x11e6   :  { %3248 = vmatpush3.xpose.msk.msra.mxu1 %vm204_vm1, %v1528_v58 }
0x11e9   :  { %3250 = vmatmul.mubr.msk.f32.vlgmr.msra.gmra.mxu1 %vm204_vm1, %v3904_v54 }
0x12a9   :  { %v3251_v59 = vpop.f32.mrf.mxu1 }
0x12aa   :  { %v1615_v60 = vmul.f32 0.35355338, %v3251_v59 }
0x12ab   :  { %v1605_v61 = vpop.f32.mrf.mxu1 }
0x12ac   :  { %v1614_v62 = vmul.f32 0.35355338, %v1605_v61  ;;  %v1617_v63 = vadd.f32 %v1615_v60, %v3641_v42 }
0x12ae   :  { %v1621_v2 = vsel %vm292_vm2, %v1617_v63, -inf  ;;  %v1616_v3 = vadd.f32 %v1614_v62, %v3646_v45 }
0x12af   :  { %1622 = vmax.xlane.f32.xlu0 %v1621_v2 }
0x12b0   :  { %v1618_v4 = vsel %vm292_vm2, %v1616_v3, -inf }
0x12b1   :  { %1619 = vmax.xlane.f32.xlu1 %v1618_v4 }
0x12c2   :  { %1640 = vrot.lane.b32.xlu1 %v3906_v56, %s3478_s20 }
0x12c5   :  { %1642 = vrot.lane.b32.xlu0 %v3904_v54, %s3478_s20  ;;  %s4216_s20 = smov 48  }
0x12c6   :  { %1733 = vrot.lane.b32.xlu1 %v3904_v54, %s3479_s21 }
0x12ca   :  { %1731 = vrot.lane.b32.xlu1 %v3906_v56, %s3479_s21  ;;  %s4217_s21 = smov 72  }
0x1338   :  { %v1623_v42 = vpop.xlane.xlu0 %1622 }
0x1339   :  { %v1625_v12 = vsub.f32 %v1617_v63, %v1623_v42 }
0x133a   :  { %v1620_v5 = vpop.xlane.xlu1 %1619 }
0x133b   :  { %v1628_v45 = vmul.f32 1.442695, %v1625_v12  ;;  %v1624_v6 = vsub.f32 %v1616_v3, %v1620_v5 }
0x133c   :  { %v1643_v11 = vpop.permute.xlu0 %1642 }
0x133d   :  { %3431 = vpow2.f32 %v1628_v45  ;;  %v1626_v8 = vmul.f32 1.442695, %v1624_v6  ;;  %3252 = vmatprep.subr.mxu1 %v1643_v11 }
0x133e   :  { %3253 = vmatpush3.msra.mxu1 %v1643_v11  ;;  %v1641_v10 = vpop.permute.xlu1 %1640 }
0x133f   :  { %3433 = vpow2.f32 %v1626_v8  ;;  %3254 = vmatprep.subr.mxu1 %v1641_v10 }
0x1340   :  { %3255 = vmatpush3.msra.mxu1 %v1641_v10 }
0x1342   :  { %v1734_v13 = vpop.permute.xlu1 %1733 }
0x1343   :  { %3259 = vmatprep.subr.msk.mxu1 %vm204_vm1, %v1734_v13 }
0x1346   :  { %v1732_v18 = vpop.permute.xlu1 %1731 }
0x134a   :  { %v3432_v14 = vpop.eup %3431 }
0x134b   :  { %v1633_v15 = vsel %vm292_vm2, %v3432_v14, 0.0 }
0x134c   :  { %v3434_v16 = vpop.eup %3433  ;;  %1634 = vadd.xlane.f32.xlu1 %v1633_v15 }
0x134d   :  { %v1630_v17 = vsel %vm292_vm2, %v3434_v16, 0.0 }
0x134e   :  { %1631 = vadd.xlane.f32.xlu0 %v1630_v17 }
0x135d   :  { %1727 = vrot.lane.b32.xlu1 %v3906_v56, %s3480_s22 }
0x1361   :  { %1935 = vrot.lane.b32.xlu1 %v3906_v56, %s3482_s24 }
0x1364   :  { %1937 = vrot.lane.b32.xlu0 %v3904_v54, %s3482_s24  ;;  %s4219_s24 = smov 40  }
0x1365   :  { %1933 = vrot.lane.b32.xlu1 %v3904_v54, %s3483_s25 }
0x1368   :  { %1729 = vrot.lane.b32.xlu0 %v3904_v54, %s3480_s22  ;;  %s4218_s22 = smov 104  }
0x136c   :  { %1931 = vrot.lane.b32.xlu0 %v3906_v56, %s3483_s25  ;;  %s4220_s25 = smov 8  }
0x13d5   :  { %v1635_v19 = vpop.xlane.xlu1 %1634 }
0x13d6   :  { %3435 = vrcp.f32 %v1635_v19 }
0x13d7   :  { %v1632_v20 = vpop.xlane.xlu0 %1631 }
0x13d8   :  { %3437 = vrcp.f32 %v1632_v20 }
0x13d9   :  { %v1728_v21 = vpop.permute.xlu1 %1727 }
0x13db   :  { %v1938_v22 = vpop.permute.xlu0 %1937 }
0x13dc   :  { %3273 = vmatprep.subr.msk.mxu0 %vm204_vm1, %v1938_v22 }
0x13dd   :  { %3274 = vmatpush3.xpose.msk.msra.mxu0 %vm204_vm1, %v1938_v22  ;;  %v1936_v23 = vpop.permute.xlu1 %1935 }
0x13de   :  { %3275 = vmatprep.subr.msk.mxu0 %vm204_vm1, %v1936_v23 }
0x13df   :  { %v1730_v24 = vpop.permute.xlu0 %1729 }
0x13e1   :  { %3276 = vmatpush3.xpose.msk.msra.mxu0 %vm204_vm1, %v1936_v23  ;;  %v1934_v7 = vpop.permute.xlu1 %1933 }
0x13e3   :  { %v1932_v25 = vpop.permute.xlu0 %1931  ;;  %v3436_v26 = vpop.eup %3435 }
0x13e4   :  { %3277 = vmatprep.mubr.msk.f32.mxu0 %vm204_vm1, %v1932_v25  ;;  %v1639_v28 = vmul.f32 %v3436_v26, %v3432_v14 }
0x13e5   :  { %v3438_v27 = vpop.eup %3437  ;;  %3278 = vmatmul.mubr.msk.f32.vlgmr.msra.gmra.mxu0 %vm204_vm1, %v1934_v7 }
0x13e6   :  { %v1638_v9 = vmul.f32 %v3438_v27, %v3434_v16 }
0x13e8   :  { %3256 = vmatprep.mubr.msk.f32.mxu1 %vm292_vm2, %v1638_v9 }
0x13e9   :  { %3257 = vmatmul.mubr.msk.f32.vlgmr.msra.gmra.mxu1 %vm292_vm2, %v1639_v28 }
0x13ea   :  { %3260 = vmatpush3.xpose.msk.msra.mxu1 %vm204_vm1, %v1734_v13  ;;  %3263 = vmatprep.mubr.msk.f32.mxu1 %vm204_vm1, %v1728_v21 }
0x13eb   :  { %3261 = vmatprep.subr.msk.mxu1 %vm204_vm1, %v1732_v18 }
0x13ee   :  { %3262 = vmatpush3.xpose.msk.msra.mxu1 %vm204_vm1, %v1732_v18 }
0x13f1   :  { %3264 = vmatmul.mubr.msk.f32.vlgmr.msra.gmra.mxu1 %vm204_vm1, %v1730_v24 }
0x14a5   :  { %v3279_v30 = vpop.f32.mrf.mxu0 }
0x14a6   :  { %v2023_v46 = vmul.f32 0.35355338, %v3279_v30 }
0x14a7   :  { %v2013_v32 = vpop.f32.mrf.mxu0 }
0x14a8   :  { %v2022_v38 = vmul.f32 0.35355338, %v2013_v32  ;;  %v2025_v36 = vadd.f32 %v3967_v39, %v2023_v46 }
0x14a9   :  { %v3960_v29 = vpop.f32.mrf.mxu1 }
0x14aa   :  { %v2024_v48 = vadd.f32 %v3974_v43, %v2022_v38  ;;  %v2029_v50 = vsel %vm292_vm2, %v2025_v36, -inf }
0x14ab   :  { %v3962_v31 = vpop.f32.mrf.mxu1 }
0x14ac   :  { %v2026_v49 = vsel %vm292_vm2, %v2024_v48, -inf }
0x14b1   :  { %v3265_v33 = vpop.f32.mrf.mxu1 }
0x14b2   :  { %v1819_v34 = vmul.f32 0.35355338, %v3265_v33 }
0x14b3   :  { %v1809_v35 = vpop.f32.mrf.mxu1 }
0x14b4   :  { %v1818_v37 = vmul.f32 0.35355338, %v1809_v35  ;;  %v1821_v40 = vadd.f32 %v3967_v39, %v1819_v34 }
0x14b6   :  { %v1825_v41 = vsel %vm292_vm2, %v1821_v40, -inf  ;;  %v1820_v44 = vadd.f32 %v3974_v43, %v1818_v37 }
0x14b7   :  { %1826 = vmax.xlane.f32.xlu1 %v1825_v41 }
0x14b8   :  { %v1822_v47 = vsel %vm292_vm2, %v1820_v44, -inf }
0x14b9   :  { %1823 = vmax.xlane.f32.xlu0 %v1822_v47 }
0x14bd   :  { %2027 = vmax.xlane.f32.xlu0 %v2026_v49 }
0x14c1   :  { %2030 = vmax.xlane.f32.xlu0 %v2029_v50 }
0x1540   :  { %v1827_v53 = vpop.xlane.xlu1 %1826 }
0x1541   :  { %v1829_v58 = vsub.f32 %v1821_v40, %v1827_v53 }
0x1542   :  { %v1824_v51 = vpop.xlane.xlu0 %1823 }
0x1543   :  { %v1828_v52 = vsub.f32 %v1820_v44, %v1824_v51  ;;  %v1832_v63 = vmul.f32 1.442695, %v1829_v58 }
0x1545   :  { %v1830_v59 = vmul.f32 1.442695, %v1828_v52 }
0x1546   :  { %v2028_v55 = vpop.xlane.xlu0 %2027 }
0x1547   :  { %v2032_v57 = vsub.f32 %v2024_v48, %v2028_v55 }
0x1549   :  { %v2034_v60 = vmul.f32 1.442695, %v2032_v57 }
0x154a   :  { %v2031_v61 = vpop.xlane.xlu0 %2030 }
0x154b   :  { %3439 = vpow2.f32 %v2034_v60  ;;  %v2033_v62 = vsub.f32 %v2025_v36, %v2031_v61 }
0x154c   :  { %3441 = vpow2.f32 %v1830_v59 }
0x154d   :  { %v2036_v2 = vmul.f32 1.442695, %v2033_v62 }
0x154f   :  { %3443 = vpow2.f32 %v2036_v2  ;;  %v2928_v2 = vld [vmem:[%s4181_s6 + $0x30] sm:$0xff] }
0x1550   :  { %3445 = vpow2.f32 %v1832_v63 }
0x1558   :  { %v3440_v3 = vpop.eup %3439 }
0x1559   :  { %v2038_v4 = vsel %vm292_vm2, %v3440_v3, 0.0  ;;  %v3442_v42 = vpop.eup %3441 }
0x155a   :  { %2039 = vadd.xlane.f32.xlu0 %v2038_v4  ;;  %v1834_v5 = vsel %vm292_vm2, %v3442_v42, 0.0  ;;  %v2926_v4 = vld [vmem:[%s4181_s6 + $0x20] sm:$0xff] }
0x155c   :  { %v3444_v12 = vpop.eup %3443 }
0x155d   :  { %v2041_v45 = vsel %vm292_vm2, %v3444_v12, 0.0  ;;  %v3446_v6 = vpop.eup %3445 }
0x155e   :  { %1835 = vadd.xlane.f32.xlu0 %v1834_v5  ;;  %2042 = vadd.xlane.f32.xlu1 %v2041_v45  ;;  %v1837_v11 = vsel %vm292_vm2, %v3446_v6, 0.0 }
0x1562   :  { %1838 = vadd.xlane.f32.xlu1 %v1837_v11 }
0x1573   :  { %1844 = vrot.lane.b32.xlu1 %v3906_v56, %s4215_s1 }
0x1574   :  { %1846 = vrot.lane.b32.xlu0 %v3904_v54, %s4215_s1 }
0x1577   :  { %2050 = vrot.lane.b32.xlu1 %v3904_v54, %s4216_s20 }
0x1578   :  { %2141 = vrot.lane.b32.xlu0 %v3904_v54, %s4217_s21 }
0x157b   :  { %2048 = vrot.lane.b32.xlu1 %v3906_v56, %s4216_s20 }
0x157c   :  { %2135 = vrot.lane.b32.xlu0 %v3906_v56, %s4218_s22 }
0x157f   :  { %2139 = vrot.lane.b32.xlu1 %v3906_v56, %s4217_s21 }
0x1583   :  { %2137 = vrot.lane.b32.xlu1 %v3904_v54, %s4218_s22 }
0x15e3   :  { %v2040_v8 = vpop.xlane.xlu0 %2039 }
0x15e7   :  { %v1836_v10 = vpop.xlane.xlu0 %1835  ;;  %v2043_v13 = vpop.xlane.xlu1 %2042 }
0x15e8   :  { %3447 = vrcp.f32 %v1836_v10 }
0x15e9   :  { %3449 = vrcp.f32 %v2040_v8 }
0x15eb   :  { %v1847_v14 = vpop.permute.xlu0 %1846  ;;  %v1839_v15 = vpop.xlane.xlu1 %1838 }
0x15ec   :  { %3451 = vrcp.f32 %v1839_v15  ;;  %3266 = vmatprep.subr.mxu1 %v1847_v14 }
0x15ed   :  { %3267 = vmatpush3.msra.mxu1 %v1847_v14  ;;  %3453 = vrcp.f32 %v2043_v13 }
0x15ef   :  { %v1845_v16 = vpop.permute.xlu1 %1844  ;;  %v2142_v22 = vpop.permute.xlu0 %2141 }
0x15f0   :  { %3268 = vmatprep.subr.mxu1 %v1845_v16 }
0x15f1   :  { %3269 = vmatpush3.msra.mxu1 %v1845_v16 }
0x15f3   :  { %v2051_v17 = vpop.permute.xlu1 %2050  ;;  %v2136_v27 = vpop.permute.xlu0 %2135 }
0x15f4   :  { %3280 = vmatprep.subr.mxu1 %v2051_v17 }
0x15f5   :  { %v3448_v18 = vpop.eup %3447 }
0x15f6   :  { %v1842_v19 = vmul.f32 %v3448_v18, %v3442_v42  ;;  %v3450_v20 = vpop.eup %3449 }
0x15f7   :  { %v2049_v25 = vpop.permute.xlu1 %2048  ;;  %v2046_v26 = vmul.f32 %v3450_v20, %v3440_v3  ;;  %v2927_v3 = vld [vmem:[%s4181_s6 + $0x28] sm:$0xff] }
0x15f8   :  { %3270 = vmatprep.mubr.msk.f32.mxu1 %vm292_vm2, %v1842_v19 }
0x15f9   :  { %v3452_v21 = vpop.eup %3451 }
0x15fa   :  { %v1843_v23 = vmul.f32 %v3452_v21, %v3446_v6  ;;  %v3454_v24 = vpop.eup %3453 }
0x15fb   :  { %v2047_v7 = vmul.f32 %v3454_v24, %v3444_v12  ;;  %v2140_v9 = vpop.permute.xlu1 %2139 }
0x15fc   :  { %3271 = vmatmul.mubr.msk.f32.vlgmr.msra.gmra.mxu1 %vm292_vm2, %v1843_v23 }
0x15fd   :  { %3281 = vmatpush3.msra.mxu1 %v2051_v17  ;;  %3284 = vmatprep.mubr.msk.f32.mxu1 %vm292_vm2, %v2046_v26 }
0x15fe   :  { %3282 = vmatprep.subr.mxu1 %v2049_v25 }
0x15ff   :  { %3283 = vmatpush3.msra.mxu1 %v2049_v25  ;;  %v2138_v28 = vpop.permute.xlu1 %2137 }
0x1600   :  { %3287 = vmatprep.subr.msk.mxu1 %vm204_vm1, %v2142_v22  ;;  %3285 = vmatmul.mubr.msk.f32.vlgmr.msra.gmra.mxu1 %vm292_vm2, %v2047_v7 }
0x1601   :  { %3288 = vmatpush3.xpose.msk.msra.mxu1 %vm204_vm1, %v2142_v22  ;;  %3291 = vmatprep.mubr.msk.f32.mxu1 %vm204_vm1, %v2136_v27 }
0x1602   :  { %3289 = vmatprep.subr.msk.mxu1 %vm204_vm1, %v2140_v9 }
0x1605   :  { %3290 = vmatpush3.xpose.msk.msra.mxu1 %vm204_vm1, %v2140_v9 }
0x1608   :  { %3292 = vmatmul.mubr.msk.f32.vlgmr.msra.gmra.mxu1 %vm204_vm1, %v2138_v28 }
0x16bc   :  { %v3272_v30 = vpop.f32.mrf.mxu1 }
0x16be   :  { %v1922_v32 = vpop.f32.mrf.mxu1 }
0x16c0   :  { %v3286_v33 = vpop.f32.mrf.mxu1 }
0x16c2   :  { %v2126_v34 = vpop.f32.mrf.mxu1 }
0x16c8   :  { %v3293_v35 = vpop.f32.mrf.mxu1 }
0x16c9   :  { %v2227_v38 = vmul.f32 0.35355338, %v3293_v35  ;;  %v2940_v35 = vld [vmem:[%s4183_s10 + $0x30] sm:$0xff] }
0x16ca   :  { %v2217_v37 = vpop.f32.mrf.mxu1 }
0x16cb   :  { %v2226_v40 = vmul.f32 0.35355338, %v2217_v37  ;;  %v2229_v41 = vadd.f32 %v3967_v39, %v2227_v38  ;;  %v2939_v38 = vld [vmem:[%s4183_s10 + $0x28] sm:$0xff]  ;;  %v2938_v37 = vld [vmem:[%s4183_s10 + $0x20] sm:$0xff] }
0x16cd   :  { %v2233_v44 = vsel %vm292_vm2, %v2229_v41, -inf  ;;  %v2228_v46 = vadd.f32 %v3974_v43, %v2226_v40  ;;  %v2961_v40 = vld [vmem:[%s4184_s12 + $0xf8] sm:$0xff] }
0x16ce   :  { %2234 = vmax.xlane.f32.xlu1 %v2233_v44  ;;  %v2959_v44 = vld [vmem:[%s4184_s12 + $0xe8] sm:$0xff] }
0x16cf   :  { %v2230_v47 = vsel %vm292_vm2, %v2228_v46, -inf }
0x16d0   :  { %2231 = vmax.xlane.f32.xlu0 %v2230_v47 }
0x16df   :  { %2252 = vrot.lane.b32.xlu1 %v3906_v56, %s4219_s24 }
0x16e3   :  { %2341 = vrot.lane.b32.xlu1 %v1922_v32, %s4220_s25 }
0x16e7   :  { %2343 = vrot.lane.b32.xlu1 %v3272_v30, %s4220_s25 }
0x16eb   :  { %2351 = vrot.lane.b32.xlu1 %v3286_v33, %s4221_s23 }
0x1757   :  { %v2235_v48 = vpop.xlane.xlu1 %2234 }
0x1758   :  { %v2237_v49 = vsub.f32 %v2229_v41, %v2235_v48  ;;  %v2960_v41 = vld [vmem:[%s4184_s12 + $0xf0] sm:$0xff] }
0x1759   :  { %v2232_v39 = vpop.xlane.xlu0 %2231 }
0x175a   :  { %v2240_v36 = vmul.f32 1.442695, %v2237_v49  ;;  %v2236_v50 = vsub.f32 %v2228_v46, %v2232_v39 }
0x175b   :  { %v2253_v59 = vpop.permute.xlu1 %2252 }
0x175c   :  { %3455 = vpow2.f32 %v2240_v36  ;;  %v2238_v43 = vmul.f32 1.442695, %v2236_v50 }
0x175e   :  { %3457 = vpow2.f32 %v2238_v43  ;;  %v2936_v43 = vld [vmem:[%s4185_s8 + $0x1] ss:$0 sm:$0xff] }
0x175f   :  { %v2342_v5 = vpop.permute.xlu1 %2341 }
0x1760   :  { %v2363_v8 = vsel %vm204_vm1, %v3962_v31, %v2342_v5  ;;  %v2931_v31 = vld [vmem:[%s4182_s7 + $0x1] ss:$0 sm:$0xff]  ;;  %v2948_v5 = vld [vmem:[%s4184_s12 + $0x90] sm:$0xff] }
0x1763   :  { %v2344_v45 = vpop.permute.xlu1 %2343 }
0x1764   :  { %v2364_v13 = vsel %vm204_vm1, %v3960_v29, %v2344_v45  ;;  %v2947_v45 = vld [vmem:[%s4184_s12 + $0x88] sm:$0xff] }
0x1767   :  { %v2352_v6 = vpop.permute.xlu1 %2351 }
0x1768   :  { %v2366_v16 = vsel %vm292_vm2, %v2364_v13, %v2352_v6  ;;  %v2946_v6 = vld [vmem:[%s4184_s12 + $0x80] sm:$0xff] }
0x1769   :  { %v3456_v51 = vpop.eup %3455 }
0x176a   :  { %v2245_v52 = vsel %vm292_vm2, %v3456_v51, 0.0 }
0x176b   :  { %v3458_v53 = vpop.eup %3457  ;;  %2246 = vadd.xlane.f32.xlu0 %v2245_v52  ;;  %v2937_v52 = vld [vmem:[%s4186_s9 + $0x1] ss:$0 sm:$0xff] }
0x176c   :  { %v2242_v56 = vsel %vm292_vm2, %v3458_v53, 0.0 }
0x176f   :  { %2243 = vadd.xlane.f32.xlu0 %v2242_v56 }
0x1785   :  { %2254 = vrot.lane.b32.xlu0 %v3904_v54, %s4219_s24  ;;  %v2929_v54 = vld [vmem:[%s4181_s6 + $0x38] sm:$0xff] }
0x1789   :  { %2349 = vrot.lane.b32.xlu0 %v2126_v34, %s4221_s23  ;;  %v2941_v34 = vld [vmem:[%s4183_s10 + $0x38] sm:$0xff] }
0x178a   :  { %3312 = vmatprep.subr.mxu1 %v2941_v34 }
0x178b   :  { %3313 = vmatpush3.msra.mxu1 %v2941_v34 }
0x178c   :  { %3314 = vmatprep.subr.mxu1 %v2940_v35 }
0x178d   :  { %3315 = vmatpush3.msra.mxu1 %v2940_v35 }
0x178e   :  { %3316 = vmatprep.subr.mxu1 %v2939_v38 }
0x178f   :  { %3317 = vmatpush3.msra.mxu1 %v2939_v38 }
0x1790   :  { %3318 = vmatprep.subr.mxu1 %v2938_v37 }
0x1791   :  { %3319 = vmatpush3.msra.mxu1 %v2938_v37 }
0x17f4   :  { %v2247_v55 = vpop.xlane.xlu0 %2246 }
0x17f5   :  { %3459 = vrcp.f32 %v2247_v55 }
0x17f8   :  { %v2244_v57 = vpop.xlane.xlu0 %2243 }
0x17f9   :  { %3461 = vrcp.f32 %v2244_v57 }
0x17fc   :  { %v2255_v58 = vpop.permute.xlu0 %2254 }
0x17fd   :  { %3294 = vmatprep.subr.mxu0 %v2255_v58 }
0x17fe   :  { %3295 = vmatpush3.msra.mxu0 %v2255_v58 }
0x17ff   :  { %3296 = vmatprep.subr.mxu0 %v2253_v59 }
0x1800   :  { %3297 = vmatpush3.msra.mxu0 %v2253_v59  ;;  %v2350_v11 = vpop.permute.xlu0 %2349 }
0x1801   :  { %3301 = vmatprep.subr.mxu0 %v2929_v54  ;;  %v2365_v14 = vsel %vm292_vm2, %v2363_v8, %v2350_v11  ;;  %v2943_v11 = vld [vmem:[%s4187_s11 + $0x1] ss:$0 sm:$0xff] }
0x1802   :  { %v3460_v60 = vpop.eup %3459 }
0x1803   :  { %v2251_v63 = vmul.f32 %v3460_v60, %v3456_v51  ;;  %v2958_v60 = vld [vmem:[%s4184_s12 + $0xe0] sm:$0xff] }
0x1806   :  { %v3462_v61 = vpop.eup %3461 }
0x1807   :  { %v2250_v62 = vmul.f32 %v3462_v61, %v3458_v53  ;;  %v2957_v61 = vld [vmem:[%s4184_s12 + $0xd8] sm:$0xff] }
0x1809   :  { %3298 = vmatprep.mubr.msk.f32.mxu0 %vm292_vm2, %v2250_v62  ;;  %v2956_v62 = vld [vmem:[%s4184_s12 + $0xd0] sm:$0xff] }
0x180a   :  { %3299 = vmatmul.mubr.msk.f32.vlgmr.msra.gmra.mxu0 %vm292_vm2, %v2251_v63  ;;  %v2955_v63 = vld [vmem:[%s4184_s12 + $0xc8] sm:$0xff] }
0x180b   :  { %3302 = vmatpush3.msra.mxu0 %v2929_v54  ;;  %v2954_v54 = vld [vmem:[%s4184_s12 + $0xc0] sm:$0xff] }
0x180c   :  { %3303 = vmatprep.subr.mxu0 %v2928_v2 }
0x180d   :  { %3304 = vmatpush3.msra.mxu0 %v2928_v2  ;;  %v2953_v2 = vld [vmem:[%s4184_s12 + $0xb8] sm:$0xff] }
0x180e   :  { %3305 = vmatprep.subr.mxu0 %v2927_v3 }
0x180f   :  { %3306 = vmatpush3.msra.mxu0 %v2927_v3  ;;  %v2952_v3 = vld [vmem:[%s4184_s12 + $0xb0] sm:$0xff] }
0x1810   :  { %3307 = vmatprep.subr.mxu0 %v2926_v4 }
0x1811   :  { %3308 = vmatpush3.msra.mxu0 %v2926_v4  ;;  %v2951_v4 = vld [vmem:[%s4184_s12 + $0xa8] sm:$0xff] }
0x1812   :  { %3323 = vmatprep.subr.mxu0 %v2961_v40 }
0x18ca   :  { %v3300_v42 = vpop.f32.mrf.mxu0 }
0x18cb   :  { %2359 = vrot.lane.b32.xlu1 %v3300_v42, %s4222_s2  ;;  %v2950_v42 = vld [vmem:[%s4184_s12 + $0xa0] sm:$0xff] }
0x18cc   :  { %v2330_v12 = vpop.f32.mrf.mxu0 }
0x18cd   :  { %2357 = vrot.lane.b32.xlu0 %v2330_v12, %s4222_s2  ;;  %v2949_v12 = vld [vmem:[%s4184_s12 + $0x98] sm:$0xff] }
0x193d   :  { %v2360_v10 = vpop.permute.xlu1 %2359 }
0x193e   :  { %v2368_v18 = vsel %vm1042_vm3, %v2366_v16, %v2360_v10 }
0x193f   :  { %v2358_v15 = vpop.permute.xlu0 %2357 }
0x1940   :  { %v2367_v17 = vsel %vm1042_vm3, %v2365_v14, %v2358_v15 }
0x1941   :  { %3309 = vmatprep.mubr.msk.f32.mxu0 %vm62_vm0, %v2367_v17 }
0x1942   :  { %3310 = vmatmul.mubr.msk.f32.vlgmr.msra.gmra.mxu0 %vm62_vm0, %v2368_v18 }
0x1943   :  { %3324 = vmatpush3.msra.mxu0 %v2961_v40 }
0x1944   :  { %3325 = vmatprep.subr.mxu0 %v2960_v41 }
0x1945   :  { %3326 = vmatpush3.msra.mxu0 %v2960_v41 }
0x1946   :  { %3327 = vmatprep.subr.mxu0 %v2959_v44 }
0x1947   :  { %3328 = vmatpush3.msra.mxu0 %v2959_v44 }
0x1948   :  { %3329 = vmatprep.subr.mxu0 %v2958_v60 }
0x1949   :  { %3330 = vmatpush3.msra.mxu0 %v2958_v60 }
0x194a   :  { %3331 = vmatprep.subr.mxu0 %v2957_v61 }
0x194b   :  { %3332 = vmatpush3.msra.mxu0 %v2957_v61 }
0x194c   :  { %3333 = vmatprep.subr.mxu0 %v2956_v62 }
0x194d   :  { %3334 = vmatpush3.msra.mxu0 %v2956_v62 }
0x194e   :  { %3335 = vmatprep.subr.mxu0 %v2955_v63 }
0x194f   :  { %3336 = vmatpush3.msra.mxu0 %v2955_v63 }
0x1950   :  { %3337 = vmatprep.subr.mxu0 %v2954_v54 }
0x1951   :  { %3338 = vmatpush3.msra.mxu0 %v2954_v54 }
0x1952   :  { %3339 = vmatprep.subr.mxu0 %v2953_v2 }
0x1953   :  { %3340 = vmatpush3.msra.mxu0 %v2953_v2 }
0x1954   :  { %3341 = vmatprep.subr.mxu0 %v2952_v3 }
0x1955   :  { %3342 = vmatpush3.msra.mxu0 %v2952_v3 }
0x1956   :  { %3343 = vmatprep.subr.mxu0 %v2951_v4 }
0x1957   :  { %3344 = vmatpush3.msra.mxu0 %v2951_v4 }
0x1958   :  { %3345 = vmatprep.subr.mxu0 %v2950_v42 }
0x1959   :  { %3346 = vmatpush3.msra.mxu0 %v2950_v42 }
0x195a   :  { %3347 = vmatprep.subr.mxu0 %v2949_v12 }
0x195b   :  { %3348 = vmatpush3.msra.mxu0 %v2949_v12 }
0x195c   :  { %3349 = vmatprep.subr.mxu0 %v2948_v5 }
0x195d   :  { %3350 = vmatpush3.msra.mxu0 %v2948_v5 }
0x195e   :  { %3351 = vmatprep.subr.mxu0 %v2947_v45 }
0x195f   :  { %3352 = vmatpush3.msra.mxu0 %v2947_v45 }
0x1960   :  { %3353 = vmatprep.subr.mxu0 %v2946_v6 }
0x1961   :  { %3354 = vmatpush3.msra.mxu0 %v2946_v6 }
0x1a02   :  { %v3311_v19 = vpop.f32.mrf.mxu0 }
0x1a03   :  { %v2460_v20 = vadd.f32 %v3311_v19, %v2931_v31 }
0x1a04   :  { %v2454_v29 = vpop.f32.mrf.mxu0 }
0x1a05   :  { %v4056_v21 = vadd.f32 %v2460_v20, %v3868_v1  ;;  %v2455_v22 = vadd.f32 %v2931_v31, %v2454_v29 }
0x1a07   :  { %v4059_v23 = vadd.f32 %v2455_v22, %v3871_v0  ;;  %v2472_v24 = vsel %vm62_vm0, %v4056_v21, 0.0 }
0x1a08   :  { %2473 = vadd.xlane.f32.xlu1 %v2472_v24 }
0x1a09   :  { %v2469_v25 = vsel %vm62_vm0, %v4059_v23, 0.0 }
0x1a0a   :  { %2470 = vadd.xlane.f32.xlu0 %v2469_v25  ;;  %v2963_v25 = vld [vmem:[%s4188_s13 + $0x1] ss:$0 sm:$0xff] }
0x1a91   :  { %v2474_v26 = vpop.xlane.xlu1 %2473 }
0x1a92   :  { %v2476_v7 = vmul.f32 0.03125, %v2474_v26 }
0x1a93   :  { %v2471_v27 = vpop.xlane.xlu0 %2470 }
0x1a94   :  { %v2475_v9 = vmul.f32 0.03125, %v2471_v27  ;;  %v2478_v28 = vsub.f32 %v4056_v21, %v2476_v7 }
0x1a96   :  { %v2477_v1 = vsub.f32 %v4059_v23, %v2475_v9  ;;  %v2480_v32 = vmul.f32 %v2478_v28, %v2478_v28 }
0x1a98   :  { %v2479_v30 = vmul.f32 %v2477_v1, %v2477_v1  ;;  %v2484_v33 = vsel %vm62_vm0, %v2480_v32, 0.0 }
0x1a9a   :  { %v2481_v0 = vsel %vm62_vm0, %v2479_v30, 0.0 }
0x1a9b   :  { %2482 = vadd.xlane.f32.xlu0 %v2481_v0 }
0x1a9f   :  { %2485 = vadd.xlane.f32.xlu0 %v2484_v33 }
0x1b24   :  { %v2483_v46 = vpop.xlane.xlu0 %2482 }
0x1b25   :  { %v2487_v47 = vmul.f32 0.03125, %v2483_v46  ;;  %v2763_v46 = vld [vmem:[%s4189_s16 + $0x10] sm:$0xff] }
0x1b27   :  { %v2489_v48 = vadd.f32 1e-05, %v2487_v47  ;;  %v2762_v47 = vld [vmem:[%s4189_s16 + $0x8] sm:$0xff] }
0x1b28   :  { %v2486_v49 = vpop.xlane.xlu0 %2485 }
0x1b29   :  { %3463 = vrsqrt.f32 %v2489_v48  ;;  %v2488_v39 = vmul.f32 0.03125, %v2486_v49  ;;  %v2761_v48 = vld [vmem:[%s4189_s16] sm:$0xff] }
0x1b2b   :  { %v2490_v36 = vadd.f32 1e-05, %v2488_v39 }
0x1b2d   :  { %3465 = vrsqrt.f32 %v2490_v36 }
0x1b36   :  { %v3464_v50 = vpop.eup %3463 }
0x1b37   :  { %v2493_v51 = vmul.f32 %v3464_v50, %v2477_v1 }
0x1b39   :  { %v2501_v53 = vmul.f32 %v2936_v43, %v2493_v51 }
0x1b3a   :  { %v3466_v56 = vpop.eup %3465 }
0x1b3b   :  { %v2494_v55 = vmul.f32 %v3466_v56, %v2478_v28  ;;  %v2509_v57 = vadd.f32 %v2937_v52, %v2501_v53  ;;  %v2964_v53 = vld [vmem:[%s4190_s14] ss:$0 sm:$0xff] }
0x1b3d   :  { %v2502_v58 = vmul.f32 %v2936_v43, %v2494_v55  ;;  %3320 = vmatprep.mubr.msk.f32.mxu1 %vm62_vm0, %v2509_v57 }
0x1b3f   :  { %v2510_v59 = vadd.f32 %v2937_v52, %v2502_v58 }
0x1b41   :  { %3321 = vmatmul.mubr.msk.f32.vlgmr.msra.gmra.mxu1 %vm62_vm0, %v2510_v59  ;;  %v2965_v59 = vld [vmem:[%s4191_s15] ss:$0 sm:$0xff] }
0x1c01   :  { %v3322_v8 = vpop.f32.mrf.mxu1 }
0x1c02   :  { %v2602_v10 = vadd.f32 %v3322_v8, %v2943_v11 }
0x1c03   :  { %v2596_v13 = vpop.f32.mrf.mxu1 }
0x1c04   :  { %v2608_v14 = vmul.f32 0.70710677, %v2602_v10  ;;  %v2597_v15 = vadd.f32 %v2943_v11, %v2596_v13  ;;  %v2606_v29 = vmul.f32 0.5, %v2602_v10 }
0x1c06   :  { %3467 = verf.f32 %v2608_v14  ;;  %v2607_v16 = vmul.f32 0.70710677, %v2597_v15  ;;  %v2605_v19 = vmul.f32 0.5, %v2597_v15 }
0x1c08   :  { %3469 = verf.f32 %v2607_v16 }
0x1c13   :  { %v3468_v17 = vpop.eup %3467 }
0x1c14   :  { %v2612_v31 = vadd.f32 1.0, %v3468_v17 }
0x1c15   :  { %v3470_v18 = vpop.eup %3469 }
0x1c16   :  { %v2611_v20 = vadd.f32 1.0, %v3470_v18  ;;  %v2614_v24 = vmul.f32 %v2612_v31, %v2606_v29 }
0x1c18   :  { %v2613_v22 = vmul.f32 %v2611_v20, %v2605_v19 }
0x1c1a   :  { %3355 = vmatprep.mubr.f32.mxu0 %v2613_v22 }
0x1c1b   :  { %3356 = vmatmul.mubr.f32.vlgmr.msra.gmra.mxu0 %v2614_v24 }
0x1cdb   :  { %v3357_v26 = vpop.f32.mrf.mxu0 }
0x1cdc   :  { %v2712_v7 = vadd.f32 %v3357_v26, %v2963_v25 }
0x1cdd   :  { %v2706_v27 = vpop.f32.mrf.mxu0 }
0x1cde   :  { %v2716_v9 = vadd.f32 %v2712_v7, %v4056_v21  ;;  %v2707_v28 = vadd.f32 %v2963_v25, %v2706_v27 }
0x1ce0   :  { %v2715_v1 = vadd.f32 %v2707_v28, %v4059_v23  ;;  %v2722_v30 = vsel %vm62_vm0, %v2716_v9, 0.0  ;;  %v2764_v23 = vld [vmem:[%s4189_s16 + $0x18] sm:$0xff] }
0x1ce1   :  { %2723 = vadd.xlane.f32.xlu1 %v2722_v30  ;;  %3358 = vmatprep.subr.mxu1 %v2764_v23 }
0x1ce2   :  { %v2719_v0 = vsel %vm62_vm0, %v2715_v1, 0.0  ;;  %3359 = vmatpush3.msra.mxu1 %v2764_v23 }
0x1ce3   :  { %2720 = vadd.xlane.f32.xlu0 %v2719_v0  ;;  %3360 = vmatprep.subr.mxu1 %v2763_v46 }
0x1ce4   :  { %3361 = vmatpush3.msra.mxu1 %v2763_v46 }
0x1ce5   :  { %3362 = vmatprep.subr.mxu1 %v2762_v47 }
0x1ce6   :  { %3363 = vmatpush3.msra.mxu1 %v2762_v47 }
0x1ce7   :  { %3364 = vmatprep.subr.mxu1 %v2761_v48 }
0x1ce8   :  { %3365 = vmatpush3.msra.mxu1 %v2761_v48 }
0x1d6a   :  { %v2724_v32 = vpop.xlane.xlu1 %2723 }
0x1d6b   :  { %v2726_v33 = vmul.f32 0.03125, %v2724_v32 }
0x1d6c   :  { %v2721_v34 = vpop.xlane.xlu0 %2720 }
0x1d6d   :  { %v2728_v35 = vsub.f32 %v2716_v9, %v2726_v33  ;;  %v2725_v38 = vmul.f32 0.03125, %v2721_v34 }
0x1d6f   :  { %v2727_v37 = vsub.f32 %v2715_v1, %v2725_v38  ;;  %v2730_v40 = vmul.f32 %v2728_v35, %v2728_v35 }
0x1d71   :  { %v2734_v41 = vsel %vm62_vm0, %v2730_v40, 0.0  ;;  %v2729_v44 = vmul.f32 %v2727_v37, %v2727_v37 }
0x1d72   :  { %2735 = vadd.xlane.f32.xlu1 %v2734_v41 }
0x1d73   :  { %v2731_v21 = vsel %vm62_vm0, %v2729_v44, 0.0 }
0x1d74   :  { %2732 = vadd.xlane.f32.xlu0 %v2731_v21 }
0x1dfb   :  { %v2736_v49 = vpop.xlane.xlu1 %2735 }
0x1dfc   :  { %v2738_v39 = vmul.f32 0.03125, %v2736_v49 }
0x1dfd   :  { %v2733_v36 = vpop.xlane.xlu0 %2732 }
0x1dfe   :  { %v2740_v50 = vadd.f32 1e-05, %v2738_v39  ;;  %v2737_v43 = vmul.f32 0.03125, %v2733_v36 }
0x1e00   :  { %3471 = vrsqrt.f32 %v2740_v50  ;;  %v2739_v51 = vadd.f32 1e-05, %v2737_v43 }
0x1e02   :  { %3473 = vrsqrt.f32 %v2739_v51 }
0x1e0d   :  { %v3472_v52 = vpop.eup %3471 }
0x1e0e   :  { %v2744_v56 = vmul.f32 %v3472_v52, %v2728_v35 }
0x1e0f   :  { %v3474_v55 = vpop.eup %3473 }
0x1e10   :  { %v2743_v57 = vmul.f32 %v3474_v55, %v2727_v37  ;;  %v2752_v58 = vmul.f32 %v2964_v53, %v2744_v56 }
0x1e12   :  { %v2751_v60 = vmul.f32 %v2964_v53, %v2743_v57  ;;  %v2760_v62 = vadd.f32 %v2965_v59, %v2752_v58 }
0x1e14   :  { %v2759_v61 = vadd.f32 %v2965_v59, %v2751_v60 }
0x1e16   :  { %3366 = vmatprep.mubr.msk.f32.mxu1 %vm62_vm0, %v2759_v61 }
0x1e17   :  { %3367 = vmatmul.mubr.msk.f32.vlgmr.msra.gmra.mxu1 %vm62_vm0, %v2760_v62 }
0x1ed7   :  { %v3368_v63 = vpop.f32.mrf.mxu1 }
0x1ed8   :  { %2847 = vst [vmem:[%s4192_s17 + $0x8] sm:$0xff] %v3368_v63 }
0x1ed9   :  { %v2837_v54 = vpop.f32.mrf.mxu1 }
0x1eda   :  { %2846 = vst [vmem:[%s4192_s17] sm:$0xff] %v2837_v54 }

</bundles_post_ra>
